<compile_context>
chip_gen: v5e
topology: v5e:2x2
jax: 0.10.0
libtpu: 0.0.40
codegen_flags: <defaults>
</compile_context>

<pallas_src>
import functools
import math

import jax
import jax.numpy as jnp
from jax.experimental import pallas as pl
from jax.experimental.pallas import tpu as pltpu

EPS = 1e-4   # self.eps in the PyTorch module


# --------------------------------------------------------------------------
# hardware / tiling / VMEM budgeting helpers
# --------------------------------------------------------------------------
def _tpu_vmem_capacity():
    """Physical VMEM bytes per TensorCore; conservative fallback = v7x (64 MiB)."""
    try:
        info = pltpu.get_tpu_info()
        for name in ("vmem_capacity_bytes", "vmem_size_bytes", "vmem_bytes"):
            cap = getattr(info, name, None)
            if cap:
                return int(cap)
    except Exception:
        pass
    return 64 * 2 ** 20


def _choose_class_tile(B, K, N, tn=None):
    """Class-tile width (multiple of 128), padded class count, tiles, VMEM budget."""
    n128 = -(-N // 128) * 128
    # 75% of physical VMEM: 48 MiB on v7x, 96 MiB on v5e/v6e (per review).
    budget = (3 * _tpu_vmem_capacity()) // 4

    def per_step(t):
        io = (K * t * 2            # W tile (bf16)
              + 2 * B * t * 4      # cosine + scaled output tiles (f32)
              + B * K * 2 + B * 4  # embeddings + labels
              + 2 * B * 4)         # per-tile target / max-non-target partials
        # Conservative: assume the f32 upcast of the W tile (and its square) used by
        # the fused column-norm reduce materializes as full (K, t) temporaries.
        temp = 2 * K * t * 4
        return 2 * io + temp       # 2x for double-buffered auto-pipelining

    if tn is None:
        # auto: largest candidate that fits the VMEM budget (cap raised to 8192)
        tn = 128
        for cand in (8192, 4096, 2048, 1024, 512, 256, 128):
            c = min(cand, n128)
            if per_step(c) <= budget:
                tn = c
                break
        num_tiles = -(-n128 // tn)
        # v7x megacore: keep at least two class tiles so both TensorCores get work.
        if num_tiles < 2 and n128 >= 256:
            num_tiles = 2
        per_tile = -(-n128 // num_tiles)
        tn = -(-per_tile // 128) * 128          # balanced tile, multiple of 128
    else:
        tn = max(128, -(-int(tn) // 128) * 128)
        tn = min(tn, n128)
        num_tiles = -(-n128 // tn)

    n_pad = num_tiles * tn
    return tn, n_pad, num_tiles, int(budget)


# --------------------------------------------------------------------------
# Kernel: for one class tile j compute
#   cosine = clamp( l2(emb) @ l2(W_tile) ),  scaled = s * cosine,
#   plus per-tile partial target logit and max non-target logit.
# No cross-tile carry -> the class axis is fully parallel (megacore-shardable).
# --------------------------------------------------------------------------
def _cosine_kernel(emb_ref, w_ref, lab_ref, cos_ref, scaled_ref, tgt_ref, mnt_ref,
                   *, n_classes, s):
    j = pl.program_id(0)

    w = w_ref[...]                                     # (K, tn) bf16 (raw weights)
    w32 = w.astype(jnp.float32)
    # Fused column L2 norm: K-reduction + rsqrt (VPU/XLU/EUP, off the MXU path).
    # TODO(synk): if a v7x bundle shows this reduce no longer hiding under the W DMA,
    # move the reduce to the idle MXU (ones(1,K) @ (w32*w32)) or precompute inv_cn.
    inv_cn = jax.lax.rsqrt(
        jnp.maximum(jnp.sum(w32 * w32, axis=0, keepdims=True), 1e-12))     # (1, tn)

    c = jnp.dot(emb_ref[...], w, preferred_element_type=jnp.float32)       # MXU, bf16 in
    c = jnp.clip(c * inv_cn, -1.0 + EPS, 1.0 - EPS)
    cos_ref[...] = c
    scaled_ref[...] = c * s                            # target column patched in glue

    tn = c.shape[1]
    col = j * tn + jax.lax.broadcasted_iota(jnp.int32, c.shape, 1)
    onehot = col == lab_ref[...]                       # (B, tn) bool
    invalid = col >= n_classes                         # zero-padded classes

    # Per-tile partials; reduced (sum / max) across tiles in tiny B-sized glue.
    # (A tile partial can be -inf only if that tile holds no valid non-target column;
    #  the cross-tile max stays finite because other tiles always have valid columns.)
    tgt_ref[...] = jnp.sum(jnp.where(onehot, c, 0.0), axis=-1, keepdims=True)
    mnt_ref[...] = jnp.max(jnp.where(onehot | invalid, -jnp.inf, c),
                           axis=-1, keepdims=True)


# --------------------------------------------------------------------------
# Wrapper (forward pass, first_batch=True semantics: t_alpha == 1.0)
# --------------------------------------------------------------------------
@functools.partial(jax.jit, static_argnames=("s", "m", "h", "tn"))
def slacked_adaface_forward(embeddings, norms, label, kernel_w,
                            s=64.0, m=0.4, h=0.333, tn=None):
    B, K = embeddings.shape
    _, N = kernel_w.shape
    tn, n_pad, num_tiles, vmem_budget = _choose_class_tile(B, K, N, tn)

    # embeddings: row-normalize in f32 (tiny), stream to the MXU in bf16
    emb_n = embeddings / jnp.linalg.norm(embeddings, axis=1, keepdims=True)
    emb_n = emb_n.astype(jnp.bfloat16)

    # weights: keep raw (column norm fused into the kernel); stream as bf16
    w = kernel_w if kernel_w.dtype == jnp.bfloat16 else kernel_w.astype(jnp.bfloat16)
    if n_pad > N:
        # TODO(synk): for a real deployment pre-pad / pre-tile W once outside the step
        # function; this per-call jnp.pad re-streams W through HBM.
        w = jnp.pad(w, ((0, 0), (0, n_pad - N)))

    lab = label.reshape(B, 1).astype(jnp.int32)

    cosine, scaled, tgt_p, mnt_p = pl.pallas_call(
        functools.partial(_cosine_kernel, n_classes=N, s=float(s)),
        out_shape=(jax.ShapeDtypeStruct((B, n_pad), jnp.float32),
                   jax.ShapeDtypeStruct((B, n_pad), jnp.float32),
                   jax.ShapeDtypeStruct((num_tiles, B, 1), jnp.float32),
                   jax.ShapeDtypeStruct((num_tiles, B, 1), jnp.float32)),
        grid=(num_tiles,),
        in_specs=[pl.BlockSpec((B, K), lambda j: (0, 0)),
                  pl.BlockSpec((K, tn), lambda j: (0, j)),
                  pl.BlockSpec((B, 1), lambda j: (0, 0))],
        out_specs=(pl.BlockSpec((B, tn), lambda j: (0, j)),
                   pl.BlockSpec((B, tn), lambda j: (0, j)),
                   # NOTE: lane width 1 -> masked stores; negligible at small B.
                   pl.BlockSpec((None, B, 1), lambda j: (j, 0, 0)),
                   pl.BlockSpec((None, B, 1), lambda j: (j, 0, 0))),
        compiler_params=pltpu.CompilerParams(
            dimension_semantics=("parallel",),
            vmem_limit_bytes=vmem_budget),
    )(emb_n, w, lab)

    # ---- B-sized glue: slacked norms, batch stats, margined target value ----
    tgt = jnp.sum(tgt_p, axis=0)                       # (B, 1) target logit
    mnt = jnp.max(mnt_p, axis=0)                       # (B, 1) max non-target logit

    # NOTE: reference clips norms to [0.001, 100] then immediately overrides the
    # clipped value with norms.detach(), so we use the raw norms here.
    safe_norms = norms
    slacked = 1.0 / (1.0 + jnp.exp(-8.0 * tgt * (tgt - mnt)))
    slacked_norms = safe_norms ** (1.0 - slacked)                  # (B, 1)

    batch_mean = jnp.mean(slacked_norms)
    # torch .std() is unbiased (ddof=1); NaN for B == 1, same as the reference.
    batch_std = jnp.std(slacked_norms, ddof=1)
    # first_batch=True -> t_alpha = 1.0, so the EMA buffers equal these batch stats.

    margin_scaler = (slacked_norms - batch_mean) / (batch_std + EPS)
    margin_scaler = jnp.clip(margin_scaler * h, -1.0, 1.0)         # (B, 1)
    g_angular = -m * margin_scaler                                 # (B, 1)
    g_add = m + m * margin_scaler                                  # (B, 1)

    # margined target column value (exact reference math, B elements only)
    theta_m = jnp.clip(jnp.arccos(tgt) + g_angular, EPS, math.pi - EPS)
    tgt_m = jnp.cos(theta_m) - g_add                               # (B, 1)

    if n_pad > N:
        cosine = cosine[:, :N]
        scaled = scaled[:, :N]
    # The margin only touches the target column -> B-element scatter in XLA.
    scaled = scaled.at[jnp.arange(B), label.astype(jnp.int32)].set(tgt_m[:, 0] * s)
    return scaled, cosine


# --------------------------------------------------------------------------
if __name__ == "__main__":
    B, IN_FEATURES, OUT_FEATURES = 8, 32, 4000   # non-multiple of 128 -> exercises padding
    key = jax.random.PRNGKey(0)
    k_w, k_e, k_l = jax.random.split(key, 3)

    # 'default' init: uniform(-1,1), columns renormed to unit L2 norm;
    # parameter stored/streamed in bf16 (the kernel re-normalizes columns anyway).
    W = jax.random.uniform(k_w, (IN_FEATURES, OUT_FEATURES), jnp.float32,
                           minval=-1.0, maxval=1.0)
    W = W / jnp.linalg.norm(W, axis=0, keepdims=True)
    W_bf16 = W.astype(jnp.bfloat16)

    embeddings = jax.random.normal(k_e, (B, IN_FEATURES), jnp.float32)
    norms = jnp.linalg.norm(embeddings, axis=1, keepdims=True)      # (B, 1)
    label = jax.random.randint(k_l, (B,), 0, OUT_FEATURES, jnp.int32)

    scaled, cosine = slacked_adaface_forward(embeddings, norms, label, W_bf16,
                                             s=64.0, m=0.4, h=0.333)
    jax.block_until_ready((scaled, cosine))

    # ---- pure-JAX reference of the module math (same bf16-rounded operands) ----
    emb_n32 = embeddings / jnp.linalg.norm(embeddings, axis=1, keepdims=True)
    emb_bf = emb_n32.astype(jnp.bfloat16).astype(jnp.float32)
    w_bf = W_bf16.astype(jnp.float32)
    cos_ref = jnp.dot(emb_bf, w_bf)
    cos_ref = cos_ref * jax.lax.rsqrt(jnp.sum(w_bf * w_bf, axis=0, keepdims=True))
    cos_ref = jnp.clip(cos_ref, -1.0 + EPS, 1.0 - EPS)
    onehot_r = (jnp.arange(OUT_FEATURES)[None, :] == label[:, None])
    tgt_r = jnp.take_along_axis(cos_ref, label[:, None], axis=1)
    mnt_r = jnp.max(jnp.where(onehot_r, -jnp.inf, cos_ref), axis=1, keepdims=True)
    slack = 1.0 / (1.0 + jnp.exp(-8.0 * tgt_r * (tgt_r - mnt_r)))
    sn = norms ** (1.0 - slack)
    ms = jnp.clip((sn - jnp.mean(sn)) / (jnp.std(sn, ddof=1) + EPS) * 0.333, -1.0, 1.0)
    m_arc = onehot_r.astype(jnp.float32) * (-0.4 * ms)
    theta_m_r = jnp.clip(jnp.arccos(cos_ref) + m_arc, EPS, math.pi - EPS)
    ref_scaled = (jnp.cos(theta_m_r) - onehot_r.astype(jnp.float32) * (0.4 + 0.4 * ms)) * 64.0

    assert scaled.shape == (B, OUT_FEATURES) and cosine.shape == (B, OUT_FEATURES)
    assert bool(jnp.all(jnp.isfinite(scaled))) and bool(jnp.all(jnp.isfinite(cosine)))
    assert float(jnp.max(jnp.abs(cosine - cos_ref))) < 2e-3
    assert float(jnp.max(jnp.abs(scaled - ref_scaled))) < 1e-1
    print("KERNEL_OK")
</pallas_src>

<mosaic_0001>
module attributes {stable_mosaic.version = 11 : i64} {
  func.func @_cosine_kernel(%arg0: i32, %arg1: memref<8x32xbf16, #tpu.memory_space<vmem>>, %arg2: memref<32x2048xbf16, #tpu.memory_space<vmem>>, %arg3: memref<8x1xi32, #tpu.memory_space<vmem>>, %arg4: memref<8x2048xf32, #tpu.memory_space<vmem>>, %arg5: memref<8x2048xf32, #tpu.memory_space<vmem>>, %arg6: memref<1x8x1xf32, #tpu.memory_space<vmem>>, %arg7: memref<1x8x1xf32, #tpu.memory_space<vmem>>) attributes {dimension_semantics = [#tpu.dimension_semantics<parallel>], iteration_bounds = array<i64: 2>, scalar_prefetch = 0 : i64, scratch_operands = 0 : i64, tpu.core_type = #tpu.core_type<tc>, window_params = [{pipeline_mode = #tpu.pipeline_mode<synchronous>, transform_indices = @transform_0, window_bounds = array<i64: 8, 32>}, {transform_indices = @transform_1, window_bounds = array<i64: 32, 2048>}, {pipeline_mode = #tpu.pipeline_mode<synchronous>, transform_indices = @transform_2, window_bounds = array<i64: 8, 1>}, {transform_indices = @transform_3, window_bounds = array<i64: 8, 2048>}, {transform_indices = @transform_4, window_bounds = array<i64: 8, 2048>}, {transform_indices = @transform_5, window_bounds = array<i64: 1, 8, 1>}, {transform_indices = @transform_6, window_bounds = array<i64: 1, 8, 1>}]} {
    %c0 = arith.constant 0 : index
    %c0_0 = arith.constant 0 : index
    %0 = vector.load %arg2[%c0, %c0_0] : memref<32x2048xbf16, #tpu.memory_space<vmem>>, vector<32x2048xbf16>
    %1 = arith.extf %0 : vector<32x2048xbf16> to vector<32x2048xf32>
    %2 = arith.mulf %1, %1 : vector<32x2048xf32>
    %cst = arith.constant dense<0.000000e+00> : vector<2048xf32>
    %3 = vector.multi_reduction <add>, %2, %cst [0] : vector<32x2048xf32> to vector<2048xf32>
    %4 = vector.shape_cast %3 : vector<2048xf32> to vector<1x2048xf32>
    %cst_1 = arith.constant 9.99999996E-13 : f32
    %5 = vector.broadcast %cst_1 : f32 to vector<1x2048xf32>
    %6 = arith.maximumf %4, %5 : vector<1x2048xf32>
    %7 = math.rsqrt %6 : vector<1x2048xf32>
    %c0_2 = arith.constant 0 : index
    %c0_3 = arith.constant 0 : index
    %8 = vector.load %arg1[%c0_2, %c0_3] : memref<8x32xbf16, #tpu.memory_space<vmem>>, vector<8x32xbf16>
    %cst_4 = arith.constant dense<0.000000e+00> : vector<8x2048xf32>
    %9 = tpu.matmul %8, %0, %cst_4 {dimension_numbers = #tpu.dot_dimension_numbers<[1], [0], [0], [1], [0, 0, 1, 1], [], []>} : vector<8x32xbf16>, vector<32x2048xbf16>, vector<8x2048xf32> -> vector<8x2048xf32>
    %10 = vector.broadcast %7 : vector<1x2048xf32> to vector<8x2048xf32>
    %11 = arith.mulf %9, %10 : vector<8x2048xf32>
    %cst_5 = arith.constant -0.999899983 : f32
    %cst_6 = arith.constant 0.999899983 : f32
    %12 = vector.broadcast %cst_5 : f32 to vector<8x2048xf32>
    %13 = arith.maximumf %12, %11 : vector<8x2048xf32>
    %14 = vector.broadcast %cst_6 : f32 to vector<8x2048xf32>
    %15 = arith.minimumf %14, %13 : vector<8x2048xf32>
    %c0_7 = arith.constant 0 : index
    %c0_8 = arith.constant 0 : index
    %16 = vector.load %arg4[%c0_7, %c0_8] : memref<8x2048xf32, #tpu.memory_space<vmem>>, vector<8x2048xf32>
    tpu.vector_store %arg4[%c0_7, %c0_8], %15 {strides = array<i32>} : memref<8x2048xf32, #tpu.memory_space<vmem>>, vector<8x2048xf32>,
    %cst_9 = arith.constant 6.400000e+01 : f32
    %17 = vector.broadcast %cst_9 : f32 to vector<8x2048xf32>
    %18 = arith.mulf %15, %17 : vector<8x2048xf32>
    %c0_10 = arith.constant 0 : index
    %c0_11 = arith.constant 0 : index
    %19 = vector.load %arg5[%c0_10, %c0_11] : memref<8x2048xf32, #tpu.memory_space<vmem>>, vector<8x2048xf32>
    tpu.vector_store %arg5[%c0_10, %c0_11], %18 {strides = array<i32>} : memref<8x2048xf32, #tpu.memory_space<vmem>>, vector<8x2048xf32>,
    %c2048_i32 = arith.constant 2048 : i32
    %20 = arith.muli %arg0, %c2048_i32 : i32
    %21 = tpu.iota {dimensions = array<i32: 1>} : vector<8x2048xi32>
    %22 = vector.broadcast %20 : i32 to vector<8x2048xi32>
    %23 = arith.addi %22, %21 : vector<8x2048xi32>
    %c0_12 = arith.constant 0 : index
    %c0_13 = arith.constant 0 : index
    %24 = vector.load %arg3[%c0_12, %c0_13] : memref<8x1xi32, #tpu.memory_space<vmem>>, vector<8x1xi32>
    %25 = vector.broadcast %24 : vector<8x1xi32> to vector<8x2048xi32>
    %26 = arith.cmpi eq, %23, %25 : vector<8x2048xi32>
    %c4000_i32 = arith.constant 4000 : i32
    %27 = vector.broadcast %c4000_i32 : i32 to vector<8x2048xi32>
    %28 = arith.cmpi sge, %23, %27 : vector<8x2048xi32>
    %cst_14 = arith.constant 0.000000e+00 : f32
    %29 = vector.broadcast %cst_14 : f32 to vector<8x2048xf32>
    %30 = arith.select %26, %15, %29 : vector<8x2048xi1>, vector<8x2048xf32>
    %cst_15 = arith.constant dense<0.000000e+00> : vector<8xf32>
    %31 = vector.multi_reduction <add>, %30, %cst_15 [1] : vector<8x2048xf32> to vector<8xf32>
    %32 = vector.shape_cast %31 : vector<8xf32> to vector<8x1xf32>
    %c0_16 = arith.constant 0 : index
    %c0_17 = arith.constant 0 : index
    %c0_18 = arith.constant 0 : index
    %33 = vector.load %arg6[%c0_16, %c0_17, %c0_18] : memref<1x8x1xf32, #tpu.memory_space<vmem>>, vector<1x8x1xf32>
    %34 = vector.shape_cast %33 : vector<1x8x1xf32> to vector<8x1xf32>
    %35 = vector.shape_cast %32 : vector<8x1xf32> to vector<1x8x1xf32>
    tpu.vector_store %arg6[%c0_16, %c0_17, %c0_18], %35 {strides = array<i32>} : memref<1x8x1xf32, #tpu.memory_space<vmem>>, vector<1x8x1xf32>,
    %36 = arith.ori %26, %28 : vector<8x2048xi1>
    %cst_19 = arith.constant 0xFF800000 : f32
    %37 = vector.broadcast %cst_19 : f32 to vector<8x2048xf32>
    %38 = arith.select %36, %37, %15 : vector<8x2048xi1>, vector<8x2048xf32>
    %cst_20 = arith.constant dense<0xFF800000> : vector<8xf32>
    %39 = vector.multi_reduction <maximumf>, %38, %cst_20 [1] : vector<8x2048xf32> to vector<8xf32>
    %40 = vector.shape_cast %39 : vector<8xf32> to vector<8x1xf32>
    %c0_21 = arith.constant 0 : index
    %c0_22 = arith.constant 0 : index
    %c0_23 = arith.constant 0 : index
    %41 = vector.load %arg7[%c0_21, %c0_22, %c0_23] : memref<1x8x1xf32, #tpu.memory_space<vmem>>, vector<1x8x1xf32>
    %42 = vector.shape_cast %41 : vector<1x8x1xf32> to vector<8x1xf32>
    %43 = vector.shape_cast %40 : vector<8x1xf32> to vector<1x8x1xf32>
    tpu.vector_store %arg7[%c0_21, %c0_22, %c0_23], %43 {strides = array<i32>} : memref<1x8x1xf32, #tpu.memory_space<vmem>>, vector<1x8x1xf32>,
    return
  }
  func.func @transform_0(%arg0: i32) -> (i32, i32) {
    %c0_i32 = arith.constant 0 : i32
    %c0_i32_0 = arith.constant 0 : i32
    %c0_i32_1 = arith.constant 0 : i32
    return %c0_i32, %c0_i32_0 : i32, i32
  }
  func.func @transform_1(%arg0: i32) -> (i32, i32) {
    %c0_i32 = arith.constant 0 : i32
    %c0_i32_0 = arith.constant 0 : i32
    return %c0_i32, %arg0 : i32, i32
  }
  func.func @transform_2(%arg0: i32) -> (i32, i32) {
    %c0_i32 = arith.constant 0 : i32
    %c0_i32_0 = arith.constant 0 : i32
    %c0_i32_1 = arith.constant 0 : i32
    return %c0_i32, %c0_i32_0 : i32, i32
  }
  func.func @transform_3(%arg0: i32) -> (i32, i32) {
    %c0_i32 = arith.constant 0 : i32
    %c0_i32_0 = arith.constant 0 : i32
    return %c0_i32, %arg0 : i32, i32
  }
  func.func @transform_4(%arg0: i32) -> (i32, i32) {
    %c0_i32 = arith.constant 0 : i32
    %c0_i32_0 = arith.constant 0 : i32
    return %c0_i32, %arg0 : i32, i32
  }
  func.func @transform_5(%arg0: i32) -> (i32, i32, i32) {
    %c0_i32 = arith.constant 0 : i32
    %c0_i32_0 = arith.constant 0 : i32
    %c0_i32_1 = arith.constant 0 : i32
    return %arg0, %c0_i32, %c0_i32_0 : i32, i32, i32
  }
  func.func @transform_6(%arg0: i32) -> (i32, i32, i32) {
    %c0_i32 = arith.constant 0 : i32
    %c0_i32_0 = arith.constant 0 : i32
    %c0_i32_1 = arith.constant 0 : i32
    return %arg0, %c0_i32, %c0_i32_0 : i32, i32, i32
  }
}

</mosaic_0001>

<bundles_post_ra>
// kernel: slacked_adaface_forward.1
= control target key start
LH: loop header
LB: loop body
LE: loop exit
PB: predicated region body
PF: predicated region fallthrough
CT: control target
= control target key end

     0   :  { %12 = vsyncpa [#allocation4], 0  ;;  %s3215_s0 = inlined_call_operand.vmem [shape: bf16[8,32], index: 0, kind: input, shape index: {}]   ;;  %s3216_s1 = inlined_call_operand.vmem [shape: bf16[32,4096], index: 1, kind: input, shape index: {}]   ;;  %s3217_s2 = inlined_call_operand.vmem [shape: s32[8,1], index: 2, kind: input, shape index: {}]   ;;  %s3218_s3 = inlined_call_operand.hbm [shape: f32[8,4096], index: 3, kind: output, shape index: {0}]   ;;  %s3219_s4 = inlined_call_operand.vmem [shape: f32[8,4096], index: 4, kind: output, shape index: {1}]   ;;  %s3220_s5 = inlined_call_operand.vmem [shape: f32[2,8,1], index: 5, kind: output, shape index: {2}]   ;;  %s3221_s6 = inlined_call_operand.vmem [shape: f32[2,8,1], index: 6, kind: output, shape index: {3}]  }
   0x1   :  { %14 = vsyncpa [#allocation4 + $0x1], 0  ;;  %s2038_s21 = smov 0   ;;  %s2040_s22 = smov 0  }
   0x2   :  { %s2042_s23 = smov 0   ;;  %s2044_s24 = smov 0  }
   0x3 LB: > { %s2059_s25 = sadd.s32 4294967295, %s2000_s24   ;;  %s1652_s26 = sadd.s32 4294967294, %s2000_s24   ;;  %s2000_s24 = sphi %s2044_s24, %s3288_s24   ;;  %s1996_s23 = sphi %s2042_s23, %s3287_s23   ;;  %s1992_s22 = sphi %s2040_s22, %s3286_s22   ;;  %s1988_s21 = sphi %s2038_s21, %s3285_s21  }
   0x4   : > { %s2063_s27 = sadd.s32 1, %s2000_s24   ;;  %s48_s28 = sadd.s32 1, %s1996_s23 }
   0x5   : > { %s45_s29 = ssub.s32 %s2000_s24, %s2063_s27  ;;  %p55_p0 = scmp.ne.s32.totalorder %s1996_s23, %s1992_s22 }
   0x6   : > { %p46_p1 = scmp.eq.s32.totalorder %s45_s29, 0  ;;  %p56_p2 = scmp.eq.s32.totalorder %s2000_s24, 0 }
   0x7   : > { %p106_p3 = scmp.eq.s32.totalorder %s2059_s25, 1  ;;  %p111_p4 = scmp.ne.s32.totalorder %s1992_s22, %s1988_s21 }
   0x8   : > { %s2075_s30 = scalar_select %p46_p1, %s1996_s23, %s48_s28  }
   0x9   : > { %p57_p5 = por %p56_p2, %p55_p0  ;;  %p2077_p6 = por %p106_p3, %p55_p0 }
   0xa   : > { %p112_p7 = scmp.eq.s32.totalorder %s1652_s26, 1  ;;  %p1654_p9 = scmp.ge.s32.totalorder %s2000_s24, 2 }
   0xc   : > { %p2081_p8 = por %p112_p7, %p111_p4  ;;  %212 = sbr.rel (%p1654_p9) target bundleno = 53 (0x35), region = 24 }
  0x11   : > { %215 = sbr.rel (!%p57_p5) target bundleno = 53 (0x35), region = 28  ;;  %s217_s9 = sand.u32 (%p57_p5), 1, %s1996_s23  }
  0x12   : > { %s1831_s10 = sshll.u32 (%p57_p5), %s2000_s24, 6  ;;  %s1655_s11 = sshll.u32 (%p57_p5), %s217_s9, 8 }
  0x13   : > { %s2093_s14 = scalar_lea.vmem (%p57_p5), %s3216_s1, %s1831_s10  ;;  %s2098_s15 = scalar_lea.vmem (%p57_p5), [#allocation2], %s1655_s11 }
  0x14   : > { %v235_v0 = vld [vmem:[%s2093_s14] sm:$0xff] (%p57_p5)  ;;  %v237_v1 = vld [vmem:[%s2093_s14 + $0x8] sm:$0xff] (%p57_p5)  ;;  %v239_v2 = vld [vmem:[%s2093_s14 + $0x10] sm:$0xff] (%p57_p5) }
  0x15   : > { %236 = vst [vmem:[%s2098_s15] sm:$0xff] (%p57_p5), %v235_v0  ;;  %v241_v3 = vld [vmem:[%s2093_s14 + $0x18] sm:$0xff] (%p57_p5)  ;;  %v243_v4 = vld [vmem:[%s2093_s14 + $0x20] sm:$0xff] (%p57_p5)  ;;  %v245_v5 = vld [vmem:[%s2093_s14 + $0x28] sm:$0xff] (%p57_p5) }
  0x16   : > { %238 = vst [vmem:[%s2098_s15 + $0x8] sm:$0xff] %v237_v1  ;;  %v247_v6 = vld [vmem:[%s2093_s14 + $0x30] sm:$0xff]  ;;  %v249_v7 = vld [vmem:[%s2093_s14 + $0x38] sm:$0xff]  ;;  %v251_v8 = vld [vmem:[%s2093_s14 + $0x80] sm:$0xff] }
  0x17   : > { %240 = vst [vmem:[%s2098_s15 + $0x10] sm:$0xff] %v239_v2  ;;  %v253_v9 = vld [vmem:[%s2093_s14 + $0x88] sm:$0xff]  ;;  %v255_v10 = vld [vmem:[%s2093_s14 + $0x90] sm:$0xff]  ;;  %v257_v11 = vld [vmem:[%s2093_s14 + $0x98] sm:$0xff] }
  0x18   : > { %242 = vst [vmem:[%s2098_s15 + $0x18] sm:$0xff] %v241_v3  ;;  %v259_v12 = vld [vmem:[%s2093_s14 + $0xa0] sm:$0xff]  ;;  %v261_v13 = vld [vmem:[%s2093_s14 + $0xa8] sm:$0xff]  ;;  %v263_v14 = vld [vmem:[%s2093_s14 + $0xb0] sm:$0xff] }
  0x19   : > { %244 = vst [vmem:[%s2098_s15 + $0x20] sm:$0xff] %v243_v4  ;;  %v265_v15 = vld [vmem:[%s2093_s14 + $0xb8] sm:$0xff]  ;;  %v267_v16 = vld [vmem:[%s2093_s14 + $0x100] sm:$0xff]  ;;  %v269_v17 = vld [vmem:[%s2093_s14 + $0x108] sm:$0xff] }
  0x1a   : > { %246 = vst [vmem:[%s2098_s15 + $0x28] sm:$0xff] %v245_v5  ;;  %v271_v18 = vld [vmem:[%s2093_s14 + $0x110] sm:$0xff]  ;;  %v273_v19 = vld [vmem:[%s2093_s14 + $0x118] sm:$0xff]  ;;  %v275_v20 = vld [vmem:[%s2093_s14 + $0x120] sm:$0xff] }
  0x1b   : > { %248 = vst [vmem:[%s2098_s15 + $0x30] sm:$0xff] %v247_v6  ;;  %v277_v21 = vld [vmem:[%s2093_s14 + $0x128] sm:$0xff]  ;;  %v279_v22 = vld [vmem:[%s2093_s14 + $0x130] sm:$0xff]  ;;  %v281_v23 = vld [vmem:[%s2093_s14 + $0x138] sm:$0xff] }
  0x1c   : > { %250 = vst [vmem:[%s2098_s15 + $0x38] sm:$0xff] %v249_v7  ;;  %v283_v24 = vld [vmem:[%s2093_s14 + $0x180] sm:$0xff]  ;;  %v285_v25 = vld [vmem:[%s2093_s14 + $0x188] sm:$0xff]  ;;  %v287_v26 = vld [vmem:[%s2093_s14 + $0x190] sm:$0xff] }
  0x1d   : > { %252 = vst [vmem:[%s2098_s15 + $0x40] sm:$0xff] %v251_v8  ;;  %v289_v27 = vld [vmem:[%s2093_s14 + $0x198] sm:$0xff]  ;;  %v291_v28 = vld [vmem:[%s2093_s14 + $0x1a0] sm:$0xff]  ;;  %v293_v29 = vld [vmem:[%s2093_s14 + $0x1a8] sm:$0xff] }
  0x1e   : > { %254 = vst [vmem:[%s2098_s15 + $0x48] sm:$0xff] %v253_v9  ;;  %v295_v30 = vld [vmem:[%s2093_s14 + $0x1b0] sm:$0xff]  ;;  %v297_v31 = vld [vmem:[%s2093_s14 + $0x1b8] sm:$0xff] }
  0x1f   : > { %256 = vst [vmem:[%s2098_s15 + $0x50] sm:$0xff] %v255_v10 }
  0x20   : > { %258 = vst [vmem:[%s2098_s15 + $0x58] sm:$0xff] %v257_v11 }
  0x21   : > { %260 = vst [vmem:[%s2098_s15 + $0x60] sm:$0xff] %v259_v12 }
  0x22   : > { %262 = vst [vmem:[%s2098_s15 + $0x68] sm:$0xff] %v261_v13 }
  0x23   : > { %264 = vst [vmem:[%s2098_s15 + $0x70] sm:$0xff] %v263_v14 }
  0x24   : > { %266 = vst [vmem:[%s2098_s15 + $0x78] sm:$0xff] %v265_v15 }
  0x25   : > { %268 = vst [vmem:[%s2098_s15 + $0x80] sm:$0xff] %v267_v16 }
  0x26   : > { %270 = vst [vmem:[%s2098_s15 + $0x88] sm:$0xff] %v269_v17 }
  0x27   : > { %272 = vst [vmem:[%s2098_s15 + $0x90] sm:$0xff] %v271_v18 }
  0x28   : > { %274 = vst [vmem:[%s2098_s15 + $0x98] sm:$0xff] %v273_v19 }
  0x29   : > { %276 = vst [vmem:[%s2098_s15 + $0xa0] sm:$0xff] %v275_v20 }
  0x2a   : > { %278 = vst [vmem:[%s2098_s15 + $0xa8] sm:$0xff] %v277_v21 }
  0x2b   : > { %280 = vst [vmem:[%s2098_s15 + $0xb0] sm:$0xff] %v279_v22 }
  0x2c   : > { %282 = vst [vmem:[%s2098_s15 + $0xb8] sm:$0xff] %v281_v23 }
  0x2d   : > { %284 = vst [vmem:[%s2098_s15 + $0xc0] sm:$0xff] %v283_v24 }
  0x2e   : > { %286 = vst [vmem:[%s2098_s15 + $0xc8] sm:$0xff] %v285_v25 }
  0x2f   : > { %288 = vst [vmem:[%s2098_s15 + $0xd0] sm:$0xff] %v287_v26 }
  0x30   : > { %290 = vst [vmem:[%s2098_s15 + $0xd8] sm:$0xff] %v289_v27 }
  0x31   : > { %292 = vst [vmem:[%s2098_s15 + $0xe0] sm:$0xff] %v291_v28 }
  0x32   : > { %294 = vst [vmem:[%s2098_s15 + $0xe8] sm:$0xff] %v293_v29 }
  0x33   : > { %296 = vst [vmem:[%s2098_s15 + $0xf0] sm:$0xff] %v295_v30 }
  0x34   : > { %298 = vst [vmem:[%s2098_s15 + $0xf8] sm:$0xff] %v297_v31 }
  0x35 PF: > { %p1658_p10 = scmp.ge.s32.totalorder %s2000_s24, 1  ;;  %p303_p11 = scmp.lt.s32.totalorder %s2000_s24, 3 }
  0x37   : > { %p304_p12 = pnand %p1658_p10, %p303_p11 }
  0x38   : > { %s2164_s16 = sand.u32 (!%p304_p12), 1, %s1992_s22   ;;  %s1825_s29 = sshll.u32 (!%p304_p12), %s2059_s25, 11 }
  0x39   : > { %307 = sbr.rel (%p304_p12) target bundleno = 410 (0x19a), region = 51  ;;  %s1659_s19 = sshll.u32 (!%p304_p12), %s2164_s16, 8 }
  0x3a   : > { %s2170_s20 = scalar_lea.vmem (!%p304_p12), [#allocation2], %s1659_s19  ;;  %s1661_s9 = sshll.u32 (!%p304_p12), %s2059_s25, 4 }
  0x3b   : > { %p2423_p13 = scmp.lt.s32.totalorder (!%p304_p12), %s1661_s9, 31  ;;  %s1660_s11 = sshll.u32 (!%p304_p12), %s2164_s16, 7 }
  0x3c   : > { %s2516_s17 = scalar_lea.vmem (!%p304_p12), [#allocation3], %s1660_s11  ;;  %s1864_s18 = sshll.u32 (!%p304_p12), %s2059_s25, 7 }
  0x3d   : > { %s1499_s26 = scalar_lea.hbm (!%p304_p12), %s3218_s3, %s1864_s18  ;;  %s1501_s28 = sshll.u32 (!%p304_p12), %s2516_s17, 4  ;;  %s1502_s28 = int_to_ptr.vmem [resolvable:$true] %s1501_s28 }
  0x3e   : > { %v1353_v32 = vld [vmem:[%s3217_s2] sm:$0xff]  ;;  %v2002_v33 = vmov 0   ;;  %vm1010_vm0 = vcmask 261120   ;;  %v1739_v39 = vld [vmem:[%s2170_s20 + $0x88] sm:$0xf]  ;;  %s3290_s9 = smov (!%p2423_p13, %s1661_s9), 31 }
  0x3f   : > { %1905 = vset.pattern.permute.xlu0 %v2002_v33  ;;  %v1731_v34 = vld [vmem:[%s2170_s20 + $0x80] sm:$0xf]  ;;  %v1848_v36 = vld [vmem:[%s2170_s20 + $0x84] sm:$0xf]  ;;  %v1857_v40 = vld [vmem:[%s2170_s20 + $0xc4] sm:$0xf0] }
  0x40   : > { %1355 = vperm.xlu0 %1905, %v1353_v32   ;;  %v1856_v35 = vld [vmem:[%s2170_s20 + $0xbc] sm:$0xf0]  ;;  %v1733_v38 = vld [vmem:[%s2170_s20 + $0xc0] sm:$0xf0]  ;;  %v1740_v42 = vor.u32 %v1857_v40, %v1739_v39  ;;  %v1849_v43 = vld [vmem:[%s2170_s20 + $0x8c] sm:$0xf] }
  0x41   : > { %v1732_v37 = vor.u32 %v1856_v35, %v1731_v34  ;;  %v1736_v41 = vor.u32 %v1848_v36, %v1733_v38  ;;  %v1741_v44 = vld [vmem:[%s2170_s20 + $0xc8] sm:$0xf0]  ;;  %v1667_v45 = vld [vmem:[%s2170_s20] sm:$0xf]  ;;  %v1832_v48 = vld [vmem:[%s2170_s20 + $0x4] sm:$0xf] }
  0x42   : > { %v1744_v46 = vor.u32 %v1849_v43, %v1741_v44  ;;  %v1840_v47 = vld [vmem:[%s2170_s20 + $0x3c] sm:$0xf0]  ;;  %v1669_v49 = vld [vmem:[%s2170_s20 + $0x40] sm:$0xf0]  ;;  %1046 = vmatpush.bf16.msra.mxu2 %v1740_v42  ;;  %v1675_v52 = vld [vmem:[%s2170_s20 + $0x8] sm:$0xf] }
  0x43   : > { %1020 = vmatpush.bf16.msra.mxu0 %v1732_v37  ;;  %1033 = vmatpush.bf16.msra.mxu1 %v1736_v41  ;;  %v1668_v50 = vor.u32 %v1840_v47, %v1667_v45  ;;  %v1672_v51 = vor.u32 %v1832_v48, %v1669_v49  ;;  %v1841_v53 = vld [vmem:[%s2170_s20 + $0x44] sm:$0xf0]  ;;  %v1833_v54 = vld [vmem:[%s2170_s20 + $0xc] sm:$0xf]  ;;  %v2191_v57 = vld [vmem:[%s3215_s0] sm:$0xf] }
  0x44   : > { %1059 = vmatpush.bf16.msra.mxu3 %v1744_v46  ;;  %v1676_v55 = vor.u32 %v1841_v53, %v1675_v52  ;;  %v1677_v56 = vld [vmem:[%s2170_s20 + $0x48] sm:$0xf0]  ;;  %v1755_v58 = vld [vmem:[%s2170_s20 + $0x98] sm:$0xf]  ;;  %v1851_v62 = vld [vmem:[%s2170_s20 + $0x9c] sm:$0xf] }
  0x45   : > { %v1859_v59 = vld [vmem:[%s2170_s20 + $0xd4] sm:$0xf0]  ;;  %v1680_v60 = vor.u32 %v1833_v54, %v1677_v56  ;;  %v1757_v63 = vld [vmem:[%s2170_s20 + $0xd8] sm:$0xf0]  ;;  %v1747_v0 = vld [vmem:[%s2170_s20 + $0x90] sm:$0xf] }
  0x46   : > { %v1756_v61 = vor.u32 %v1859_v59, %v1755_v58  ;;  %v1760_v1 = vor.u32 %v1851_v62, %v1757_v63  ;;  %v1858_v2 = vld [vmem:[%s2170_s20 + $0xcc] sm:$0xf0]  ;;  %v1850_v3 = vld [vmem:[%s2170_s20 + $0x94] sm:$0xf]  ;;  %1047 = vmatpush.bf16.msra.mxu2 %v1676_v55  ;;  %v1691_v6 = vld [vmem:[%s2170_s20 + $0x18] sm:$0xf] }
  0x47   : > { %1021 = vmatpush.bf16.msra.mxu0 %v1668_v50  ;;  %v1749_v4 = vld [vmem:[%s2170_s20 + $0xd0] sm:$0xf0]  ;;  %1034 = vmatpush.bf16.msra.mxu1 %v1672_v51  ;;  %v1748_v5 = vor.u32 %v1858_v2, %v1747_v0  ;;  %v1843_v7 = vld [vmem:[%s2170_s20 + $0x54] sm:$0xf0]  ;;  %v1835_v8 = vld [vmem:[%s2170_s20 + $0x1c] sm:$0xf] }
  0x48   : > { %1060 = vmatpush.bf16.msra.mxu3 %v1680_v60  ;;  %v1752_v9 = vor.u32 %v1850_v3, %v1749_v4  ;;  %v1692_v10 = vor.u32 %v1843_v7, %v1691_v6  ;;  %v1693_v11 = vld [vmem:[%s2170_s20 + $0x58] sm:$0xf0]  ;;  %v1683_v12 = vld [vmem:[%s2170_s20 + $0x10] sm:$0xf]  ;;  %v1834_v15 = vld [vmem:[%s2170_s20 + $0x14] sm:$0xf] }
  0x49   : > { %v1842_v13 = vld [vmem:[%s2170_s20 + $0x4c] sm:$0xf0]  ;;  %v1696_v14 = vor.u32 %v1835_v8, %v1693_v11  ;;  %v1685_v16 = vld [vmem:[%s2170_s20 + $0x50] sm:$0xf0]  ;;  %v1771_v17 = vld [vmem:[%s2170_s20 + $0xa8] sm:$0xf]  ;;  %1795 = vmatmul.msk.bf16.vlgmr.msra.gmra.mxu2 %vm1010_vm0, %v2191_v57 }
  0x4a   : > { %1098 = vmatpush.bf16.msrb.mxu2 %v1756_v61  ;;  %1793 = vmatmul.msk.bf16.vlgmr.msra.gmra.mxu0 %vm1010_vm0, %v2191_v57  ;;  %v1861_v18 = vld [vmem:[%s2170_s20 + $0xe4] sm:$0xf0]  ;;  %v1853_v19 = vld [vmem:[%s2170_s20 + $0xac] sm:$0xf]  ;;  %v1684_v21 = vor.u32 %v1842_v13, %v1683_v12  ;;  %v1763_v24 = vld [vmem:[%s2170_s20 + $0xa0] sm:$0xf]  ;;  %v1688_v27 = vor.u32 %v1834_v15, %v1685_v16 }
  0x4b   : > { %1794 = vmatmul.msk.bf16.vlgmr.msra.gmra.mxu1 %vm1010_vm0, %v2191_v57  ;;  %v1773_v20 = vld [vmem:[%s2170_s20 + $0xe8] sm:$0xf0]  ;;  %1796 = vmatmul.msk.bf16.vlgmr.msra.gmra.mxu3 %vm1010_vm0, %v2191_v57  ;;  %v1772_v22 = vor.u32 %v1861_v18, %v1771_v17  ;;  %v1860_v25 = vld [vmem:[%s2170_s20 + $0xdc] sm:$0xf0]  ;;  %v1852_v26 = vld [vmem:[%s2170_s20 + $0xa4] sm:$0xf] }
  0x4c   : > { %1111 = vmatpush.bf16.msrb.mxu3 %v1760_v1  ;;  %1072 = vmatpush.bf16.msrb.mxu0 %v1748_v5  ;;  %v1776_v23 = vor.u32 %v1853_v19, %v1773_v20  ;;  %v1764_v28 = vor.u32 %v1860_v25, %v1763_v24  ;;  %v1765_v29 = vld [vmem:[%s2170_s20 + $0xe0] sm:$0xf0]  ;;  %v1707_v30 = vld [vmem:[%s2170_s20 + $0x28] sm:$0xf]  ;;  %v1837_v34 = vld [vmem:[%s2170_s20 + $0x2c] sm:$0xf] }
  0x4d   : > { %1085 = vmatpush.bf16.msrb.mxu1 %v1752_v9  ;;  %v1845_v31 = vld [vmem:[%s2170_s20 + $0x64] sm:$0xf0]  ;;  %v1768_v32 = vor.u32 %v1852_v26, %v1765_v29  ;;  %v1709_v35 = vld [vmem:[%s2170_s20 + $0x68] sm:$0xf0]  ;;  %v1699_v36 = vld [vmem:[%s2170_s20 + $0x20] sm:$0xf] }
  0x4e   : > { %1099 = vmatpush.bf16.msrb.mxu2 %v1692_v10  ;;  %v1708_v33 = vor.u32 %v1845_v31, %v1707_v30  ;;  %v1712_v37 = vor.u32 %v1837_v34, %v1709_v35  ;;  %v1844_v38 = vld [vmem:[%s2170_s20 + $0x5c] sm:$0xf0]  ;;  %v1836_v39 = vld [vmem:[%s2170_s20 + $0x24] sm:$0xf]  ;;  %v1787_v43 = vld [vmem:[%s2170_s20 + $0xb8] sm:$0xf] }
  0x4f   : > { %v1701_v40 = vld [vmem:[%s2170_s20 + $0x60] sm:$0xf0]  ;;  %v1700_v41 = vor.u32 %v1844_v38, %v1699_v36  ;;  %v1863_v44 = vld [vmem:[%s2170_s20 + $0xf4] sm:$0xf0]  ;;  %v1855_v45 = vld [vmem:[%s2170_s20 + $0xbc] sm:$0xf] }
  0x50   : > { %1112 = vmatpush.bf16.msrb.mxu3 %v1696_v14  ;;  %1073 = vmatpush.bf16.msrb.mxu0 %v1684_v21  ;;  %v1704_v42 = vor.u32 %v1836_v39, %v1701_v40  ;;  %v1789_v46 = vld [vmem:[%s2170_s20 + $0xf8] sm:$0xf0]  ;;  %v1779_v47 = vld [vmem:[%s2170_s20 + $0xb0] sm:$0xf]  ;;  %v1854_v49 = vld [vmem:[%s2170_s20 + $0xb4] sm:$0xf]  ;;  %v1788_v51 = vor.u32 %v1863_v44, %v1787_v43 }
  0x51   : > { %1086 = vmatpush.bf16.msrb.mxu1 %v1688_v27  ;;  %v1862_v48 = vld [vmem:[%s2170_s20 + $0xec] sm:$0xf0]  ;;  %v1781_v50 = vld [vmem:[%s2170_s20 + $0xf0] sm:$0xf0]  ;;  %v1792_v52 = vor.u32 %v1855_v45, %v1789_v46  ;;  %v1723_v54 = vld [vmem:[%s2170_s20 + $0x38] sm:$0xf] }
  0x52   : > { %1150 = vmatpush.bf16.msra.mxu2 %v1772_v22  ;;  %v1780_v53 = vor.u32 %v1862_v48, %v1779_v47  ;;  %v1847_v55 = vld [vmem:[%s2170_s20 + $0x74] sm:$0xf0]  ;;  %v1839_v56 = vld [vmem:[%s2170_s20 + $0x3c] sm:$0xf]  ;;  %v1784_v58 = vor.u32 %v1854_v49, %v1781_v50  ;;  %v1715_v60 = vld [vmem:[%s2170_s20 + $0x30] sm:$0xf] }
  0x53   : > { %v1725_v59 = vld [vmem:[%s2170_s20 + $0x78] sm:$0xf0]  ;;  %v1846_v61 = vld [vmem:[%s2170_s20 + $0x6c] sm:$0xf0]  ;;  %v1838_v62 = vld [vmem:[%s2170_s20 + $0x34] sm:$0xf]  ;;  %v1724_v0 = vor.u32 %v1847_v55, %v1723_v54 }
  0x54   : > { %1163 = vmatpush.bf16.msra.mxu3 %v1776_v23  ;;  %1124 = vmatpush.bf16.msra.mxu0 %v1764_v28  ;;  %v1717_v63 = vld [vmem:[%s2170_s20 + $0x70] sm:$0xf0]  ;;  %v369_v1 = vld [vmem:[%s2170_s20] sm:$0xff]  ;;  %v1728_v3 = vor.u32 %v1839_v56, %v1725_v59  ;;  %v1716_v4 = vor.u32 %v1846_v61, %v1715_v60  ;;  %v370_v26 = vld [vmem:[%s2170_s20 + $0x8] sm:$0xff]  ;;  %s1662_s12 = sshll.u32 %s3290_s9, 3  ;;  %s1475_s9 = scalar_lea.sflag [#allocation4], %s2164_s16 }
  0x55   : > { %1137 = vmatpush.bf16.msra.mxu1 %v1768_v32  ;;  %v377_v2 = vld [vmem:[%s2170_s20 + $0x40] sm:$0xff]  ;;  %v1720_v5 = vor.u32 %v1838_v62, %v1717_v63  ;;  %v401_v6 = vunpack.c.l.bf16 %v369_v1  ;;  %v402_v24 = vunpack.c.h.bf16 %v369_v1  ;;  %v378_v27 = vld [vmem:[%s2170_s20 + $0x48] sm:$0xff]  ;;  %v404_v35 = vunpack.c.h.bf16 %v370_v26  ;;  %v371_v63 = vld [vmem:[%s2170_s20 + $0x10] sm:$0xff]  ;;  %s2508_s15 = scalar_lea.vmem %s3219_s4, %s1662_s12  ;;  %s1958_s14 = scalar_lea.hbm %s3218_s3, 256 }
  0x56   : > { %1151 = vmatpush.bf16.msra.mxu2 %v1708_v33  ;;  %v417_v7 = vunpack.c.l.bf16 %v377_v2  ;;  %v385_v8 = vld [vmem:[%s2170_s20 + $0x80] sm:$0xff]  ;;  %v418_v25 = vunpack.c.h.bf16 %v377_v2  ;;  %v386_v32 = vld [vmem:[%s2170_s20 + $0x88] sm:$0xff]  ;;  %v403_v33 = vunpack.c.l.bf16 %v370_v26  ;;  %v419_v34 = vunpack.c.l.bf16 %v378_v27  ;;  %v372_v26 = vld [vmem:[%s2170_s20 + $0x18] sm:$0xff] }
  0x57   : > { %v433_v9 = vunpack.c.l.bf16 %v385_v8  ;;  %v465_v10 = vmul.f32 %v401_v6, %v401_v6  ;;  %v393_v12 = vld [vmem:[%s2170_s20 + $0xc0] sm:$0xff]  ;;  %v434_v29 = vunpack.c.h.bf16 %v385_v8  ;;  %v466_v30 = vmul.f32 %v402_v24, %v402_v24  ;;  %v394_v40 = vld [vmem:[%s2170_s20 + $0xc8] sm:$0xff] }
  0x58   : > { %1164 = vmatpush.bf16.msra.mxu3 %v1712_v37  ;;  %1125 = vmatpush.bf16.msra.mxu0 %v1700_v41  ;;  %v481_v11 = vmul.f32 %v417_v7, %v417_v7  ;;  %v449_v13 = vunpack.c.l.bf16 %v393_v12  ;;  %v482_v31 = vmul.f32 %v418_v25, %v418_v25  ;;  %v420_v36 = vunpack.c.h.bf16 %v378_v27  ;;  %v387_v7 = vld [vmem:[%s2170_s20 + $0x90] sm:$0xff]  ;;  %v380_v27 = vld [vmem:[%s2170_s20 + $0x58] sm:$0xff] }
  0x59   : > { %1138 = vmatpush.bf16.msra.mxu1 %v1704_v42  ;;  %1799 = vmatmul.msk.bf16.vlgmr.msrb.gmra.mxu2 %vm1010_vm0, %v2191_v57  ;;  %v497_v14 = vmul.f32 %v433_v9, %v433_v9  ;;  %v450_v37 = vunpack.c.h.bf16 %v393_v12  ;;  %v498_v38 = vmul.f32 %v434_v29, %v434_v29  ;;  %v467_v41 = vmul.f32 %v403_v33, %v403_v33 }
  0x5a   : > { %1797 = vmatmul.msk.bf16.vlgmr.msrb.gmra.mxu0 %vm1010_vm0, %v2191_v57  ;;  %1202 = vmatpush.bf16.msrb.mxu2 %v1788_v51  ;;  %v529_v15 = vadd.f32 %v481_v11, %v465_v10  ;;  %v513_v16 = vmul.f32 %v449_v13, %v449_v13  ;;  %v538_v39 = vadd.f32 %v482_v31, %v466_v30  ;;  %v436_v43 = vunpack.c.h.bf16 %v386_v32 }
  0x5b   : > { %1798 = vmatmul.msk.bf16.vlgmr.msrb.gmra.mxu1 %vm1010_vm0, %v2191_v57  ;;  %1800 = vmatmul.msk.bf16.vlgmr.msrb.gmra.mxu3 %vm1010_vm0, %v2191_v57  ;;  %v483_v42 = vmul.f32 %v419_v34, %v419_v34  ;;  %v468_v44 = vmul.f32 %v404_v35, %v404_v35  ;;  %v514_v45 = vmul.f32 %v450_v37, %v450_v37  ;;  %v451_v47 = vunpack.c.l.bf16 %v394_v40  ;;  %v388_v37 = vld [vmem:[%s2170_s20 + $0x98] sm:$0xff] }
  0x5c   : > { %1215 = vmatpush.bf16.msrb.mxu3 %v1792_v52  ;;  %1176 = vmatpush.bf16.msrb.mxu0 %v1780_v53  ;;  %v530_v17 = vadd.f32 %v529_v15, %v497_v14  ;;  %v539_v46 = vadd.f32 %v538_v39, %v498_v38  ;;  %v452_v50 = vunpack.c.h.bf16 %v394_v40  ;;  %v484_v51 = vmul.f32 %v420_v36, %v420_v36  ;;  %v395_v15 = vld [vmem:[%s2170_s20 + $0xd0] sm:$0xff] }
  0x5d   : > { %1189 = vmatpush.bf16.msrb.mxu1 %v1784_v58  ;;  %v547_v49 = vadd.f32 %v483_v42, %v467_v41  ;;  %v500_v52 = vmul.f32 %v436_v43, %v436_v43  ;;  %v515_v54 = vmul.f32 %v451_v47, %v451_v47  ;;  %v405_v2 = vunpack.c.l.bf16 %v371_v63 }
  0x5e   : > { %1203 = vmatpush.bf16.msrb.mxu2 %v1724_v0  ;;  %v531_v18 = vadd.f32 %v530_v17, %v513_v16  ;;  %v540_v53 = vadd.f32 %v539_v46, %v514_v45  ;;  %v516_v58 = vmul.f32 %v452_v50, %v452_v50  ;;  %v556_v59 = vadd.f32 %v484_v51, %v468_v44  ;;  %v379_v0 = vld [vmem:[%s2170_s20 + $0x50] sm:$0xff]  ;;  %v396_v44 = vld [vmem:[%s2170_s20 + $0xd8] sm:$0xff] }
  0x5f   : > { %v422_v8 = vunpack.c.h.bf16 %v379_v0  ;;  %v437_v10 = vunpack.c.l.bf16 %v387_v7  ;;  %v469_v11 = vmul.f32 %v405_v2, %v405_v2  ;;  %v438_v16 = vunpack.c.h.bf16 %v387_v7 }
  0x60   : > { %1216 = vmatpush.bf16.msrb.mxu3 %v1728_v3  ;;  %1177 = vmatpush.bf16.msrb.mxu0 %v1716_v4  ;;  %v532_v19 = vrot.slane %v531_v18, 4  ;;  %v541_v60 = vrot.slane %v540_v53, 4  ;;  %v557_v62 = vadd.f32 %v556_v59, %v500_v52  ;;  %v421_v3 = vunpack.c.l.bf16 %v379_v0 }
  0x61   : > { %1190 = vmatpush.bf16.msrb.mxu1 %v1720_v5  ;;  %v406_v4 = vunpack.c.h.bf16 %v371_v63  ;;  %v454_v24 = vunpack.c.h.bf16 %v395_v15  ;;  %v486_v25 = vmul.f32 %v422_v8, %v422_v8  ;;  %v502_v31 = vmul.f32 %v438_v16, %v438_v16 }
  0x62   : > { %v533_v20 = vadd.f32 %v532_v19, %v531_v18  ;;  %v542_v1 = vadd.f32 %v541_v60, %v540_v53  ;;  %v558_v6 = vadd.f32 %v557_v62, %v516_v58  ;;  %v485_v12 = vmul.f32 %v421_v3, %v421_v3 }
  0x63   : > { %v470_v17 = vmul.f32 %v406_v4, %v406_v4  ;;  %v453_v19 = vunpack.c.l.bf16 %v395_v15  ;;  %v518_v35 = vmul.f32 %v454_v24, %v454_v24  ;;  %v423_v40 = vunpack.c.l.bf16 %v380_v27 }
  0x64   : > { %v534_v21 = vrot.slane %v533_v20, 2  ;;  %v543_v9 = vrot.slane %v542_v1, 2  ;;  %v559_v14 = vrot.slane %v558_v6, 4  ;;  %v439_v45 = vunpack.c.l.bf16 %v388_v37 }
  0x65   : > { %v517_v29 = vmul.f32 %v453_v19, %v453_v19  ;;  %v574_v36 = vadd.f32 %v486_v25, %v470_v17  ;;  %v487_v53 = vmul.f32 %v423_v40, %v423_v40  ;;  %v408_v0 = vunpack.c.h.bf16 %v372_v26  ;;  %v2313_v25 = vld [vmem:[%s2170_s20 + $0x60] sm:$0xff] }
  0x66   : > { %v535_v22 = vadd.f32 %v534_v21, %v533_v20  ;;  %v544_v18 = vadd.f32 %v543_v9, %v542_v1  ;;  %v501_v20 = vmul.f32 %v437_v10, %v437_v10  ;;  %v565_v21 = vadd.f32 %v485_v12, %v469_v11 }
  0x67   : > { %v575_v43 = vadd.f32 %v574_v36, %v502_v31  ;;  %v424_v1 = vunpack.c.h.bf16 %v380_v27  ;;  %v440_v2 = vunpack.c.h.bf16 %v388_v37  ;;  %v472_v7 = vmul.f32 %v408_v0, %v408_v0 }
  0x68   : > { %v536_v23 = vrot.slane %v535_v22, 1  ;;  %v566_v30 = vadd.f32 %v565_v21, %v501_v20 }
  0x69   : > { %1803 = vmatmul.msk.bf16.vlgmr.msra.gmra.mxu2 %vm1010_vm0, %v2191_v57  ;;  %v576_v52 = vadd.f32 %v575_v43, %v518_v35  ;;  %v488_v8 = vmul.f32 %v424_v1, %v424_v1  ;;  %v504_v11 = vmul.f32 %v440_v2, %v440_v2  ;;  %v425_v35 = vunpack.c.l.bf16 %v2313_v25 }
  0x6a   : > { %1801 = vmatmul.msk.bf16.vlgmr.msra.gmra.mxu0 %vm1010_vm0, %v2191_v57  ;;  %v537_v28 = vadd.f32 %v536_v23, %v535_v22  ;;  %v560_v23 = vadd.f32 %v559_v14, %v558_v6  ;;  %v567_v39 = vadd.f32 %v566_v30, %v517_v29  ;;  %v456_v6 = vunpack.c.h.bf16 %v396_v44 }
  0x6b   : > { %1802 = vmatmul.msk.bf16.vlgmr.msra.gmra.mxu1 %vm1010_vm0, %v2191_v57  ;;  %1804 = vmatmul.msk.bf16.vlgmr.msra.gmra.mxu3 %vm1010_vm0, %v2191_v57  ;;  %v592_v15 = vadd.f32 %v488_v8, %v472_v7  ;;  %v1319_v1 = vlaneseq }
  0x6c   : > { %v2281_v55 = vmax.f32 %v537_v28, 1e-12  ;;  %v545_v28 = vrot.slane %v544_v18, 1  ;;  %v561_v34 = vrot.slane %v560_v23, 2  ;;  %v568_v47 = vrot.slane %v567_v39, 4 }
  0x6d   : > { %v520_v14 = vmul.f32 %v456_v6, %v456_v6  ;;  %v593_v19 = vadd.f32 %v592_v15, %v504_v11 }
  0x6e   : > { %1906 = vrsqrt.f32 %v2281_v55  ;;  %v546_v38 = vadd.f32 %v545_v28, %v544_v18  ;;  %v562_v42 = vadd.f32 %v561_v34, %v560_v23  ;;  %v2320_v34 = vld [vmem:[%s2170_s20 + $0xa0] sm:$0xff]  ;;  %vm695_vm1 = vweird.f32 %v2281_v55 }
  0x6f   : > { %v594_v24 = vadd.f32 %v593_v19, %v520_v14  ;;  %v426_v14 = vunpack.c.h.bf16 %v2313_v25 }
  0x70   : > { %v2294_v46 = vmax.f32 %v546_v38, 1e-12  ;;  %v563_v51 = vrot.slane %v562_v42, 1 }
  0x72   : > { %1908 = vrsqrt.f32 %v2294_v46  ;;  %v564_v60 = vadd.f32 %v563_v51, %v562_v42  ;;  %vm705_vm4 = vweird.f32 %v2294_v46 }
  0x79   : > { %1807 = vmatmul.msk.bf16.vlgmr.msrb.gmra.mxu2 %vm1010_vm0, %v2191_v57 }
  0x7a   : > { %1805 = vmatmul.msk.bf16.vlgmr.msrb.gmra.mxu0 %vm1010_vm0, %v2191_v57 }
  0x7b   : > { %1806 = vmatmul.msk.bf16.vlgmr.msrb.gmra.mxu1 %vm1010_vm0, %v2191_v57  ;;  %1808 = vmatmul.msk.bf16.vlgmr.msrb.gmra.mxu3 %vm1010_vm0, %v2191_v57  ;;  %v435_v57 = vunpack.c.l.bf16 %v386_v32  ;;  %v2290_v32 = vpop.eup %1906 }
  0x7c   : > { %v2299_v12 = vpop.eup %1908  ;;  %v690_v16 = vmul.f32 %v2290_v32, %v2281_v55  ;;  %vm696_vm2 = vweird.f32 %v2290_v32 }
  0x7d   : > { %v499_v48 = vmul.f32 %v435_v57, %v435_v57  ;;  %v407_v57 = vunpack.c.l.bf16 %v372_v26  ;;  %v700_v23 = vmul.f32 %v2299_v12, %v2294_v46  ;;  %vm2347_vm3 = vmor %vm695_vm1, %vm696_vm2  ;;  %vm706_vm5 = vweird.f32 %v2299_v12 }
  0x7e   : > { %v691_v26 = vmul.f32 %v2290_v32, %v690_v16  ;;  %vm2363_vm6 = vmor %vm705_vm4, %vm706_vm5  ;;  %v2369_v16 = vand.u32 127, %v1319_v1 }
  0x7f   : > { %v548_v56 = vadd.f32 %v547_v49, %v499_v48  ;;  %v455_v48 = vunpack.c.l.bf16 %v396_v44  ;;  %v471_v49 = vmul.f32 %v407_v57, %v407_v57  ;;  %v701_v36 = vmul.f32 %v2299_v12, %v700_v23  ;;  %v2329_v57 = vld [vmem:[%s2170_s20 + $0xe0] sm:$0xff] }
  0x80   : > { %v692_v37 = vmul.f32 0.5, %v691_v26  ;;  %v442_v23 = vunpack.c.h.bf16 %v2320_v34 }
  0x81   : > { %v549_v61 = vadd.f32 %v548_v56, %v515_v54  ;;  %v569_v54 = vadd.f32 %v568_v47, %v567_v39  ;;  %v503_v56 = vmul.f32 %v439_v45, %v439_v45  ;;  %v519_v58 = vmul.f32 %v455_v48, %v455_v48 }
  0x82   : > { %v583_v62 = vadd.f32 %v487_v53, %v471_v49  ;;  %v489_v47 = vmul.f32 %v425_v35, %v425_v35  ;;  %v702_v48 = vmul.f32 0.5, %v701_v36  ;;  %v457_v49 = vunpack.c.l.bf16 %v2329_v57  ;;  %v2394_v36 = vld [vmem:[%s2170_s20 + $0x28] sm:$0xff] }
  0x83   : > { %v550_v5 = vrot.slane %v549_v61, 4  ;;  %v570_v63 = vrot.slane %v569_v54, 2 }
  0x84   : > { %v584_v4 = vadd.f32 %v583_v62, %v503_v56  ;;  %v521_v62 = vmul.f32 %v457_v49, %v457_v49  ;;  %v411_v49 = vunpack.c.l.bf16 %v2394_v36 }
  0x85   : > { %v551_v13 = vadd.f32 %v550_v5, %v549_v61  ;;  %v577_v61 = vrot.slane %v576_v52, 4  ;;  %v571_v5 = vadd.f32 %v570_v63, %v569_v54 }
  0x86   : > { %v585_v10 = vadd.f32 %v584_v4, %v519_v58 }
  0x87   : > { %v552_v22 = vrot.slane %v551_v13, 2  ;;  %v578_v3 = vadd.f32 %v577_v61, %v576_v52  ;;  %v572_v17 = vrot.slane %v571_v5, 1  ;;  %v703_v61 = vsub.f32 1.5, %v702_v48 }
  0x88   : > { %v586_v18 = vrot.slane %v585_v10, 4 }
  0x89   : > { %v553_v33 = vadd.f32 %v552_v22, %v551_v13  ;;  %v579_v9 = vrot.slane %v578_v3, 2  ;;  %v2302_v13 = vmax.f32 %v564_v60, 1e-12  ;;  %v2307_v22 = vld [vmem:[%s2170_s20 + $0x20] sm:$0xff]  ;;  %v573_v27 = vadd.f32 %v572_v17, %v571_v5 }
  0x8a   : > { %v587_v21 = vadd.f32 %v586_v18, %v585_v10  ;;  %v409_v29 = vunpack.c.l.bf16 %v2307_v22  ;;  %v2357_v7 = vmul.f32 %v2299_v12, %v703_v61  ;;  %v410_v11 = vunpack.c.h.bf16 %v2307_v22 }
  0x8b   : > { %v554_v41 = vrot.slane %v553_v33, 1  ;;  %v580_v20 = vadd.f32 %v579_v9, %v578_v3  ;;  %v2326_v39 = vmax.f32 %v573_v27, 1e-12  ;;  %vm725_vm9 = vweird.f32 %v2302_v13 }
  0x8c   : > { %v588_v31 = vrot.slane %v587_v21, 2  ;;  %v473_v42 = vmul.f32 %v409_v29, %v409_v29  ;;  %v708_v22 = vsel %vm2363_vm6, %v2299_v12, %v2357_v7  ;;  %v474_v29 = vmul.f32 %v410_v11, %v410_v11 }
  0x8d   : > { %v555_v50 = vadd.f32 %v554_v41, %v553_v33  ;;  %v581_v30 = vrot.slane %v580_v20, 1  ;;  %v595_v33 = vrot.slane %v594_v24, 4  ;;  %v441_v41 = vunpack.c.l.bf16 %v2320_v34 }
  0x8e   : > { %v589_v44 = vadd.f32 %v588_v31, %v587_v21  ;;  %v601_v60 = vadd.f32 %v489_v47, %v473_v42  ;;  %v1322_v34 = vadd.s32 256, %v2369_v16  ;;  %vm735_vm13 = vweird.f32 %v2326_v39 }
  0x8f   : > { %v2297_v59 = vmax.f32 %v555_v50, 1e-12  ;;  %v582_v43 = vadd.f32 %v581_v30, %v580_v20  ;;  %v596_v45 = vadd.f32 %v595_v33, %v594_v24  ;;  %v693_v50 = vsub.f32 1.5, %v692_v37 }
  0x90   : > { %v505_v53 = vmul.f32 %v441_v41, %v441_v41  ;;  %v590_v56 = vrot.slane %v589_v44, 1  ;;  %v458_v24 = vunpack.c.h.bf16 %v2329_v57  ;;  %v490_v30 = vmul.f32 %v426_v14, %v426_v14  ;;  %v2402_v41 = vld [vmem:[%s2170_s20 + $0x68] sm:$0xff] }
  0x91   : > { %1910 = vrsqrt.f32 %v2297_v59  ;;  %v2341_v54 = vmax.f32 %v582_v43, 1e-12  ;;  %v597_v58 = vrot.slane %v596_v45, 2  ;;  %v2344_v63 = vmul.f32 %v2290_v32, %v693_v50  ;;  %v2410_v43 = vld [vmem:[%s2170_s20 + $0xa8] sm:$0xff] }
  0x92   : > { %1912 = vrsqrt.f32 %v2302_v13  ;;  %v602_v4 = vadd.f32 %v601_v60, %v505_v53  ;;  %v591_v6 = vadd.f32 %v590_v56, %v589_v44  ;;  %vm715_vm7 = vweird.f32 %v2297_v59 }
  0x93   : > { %1914 = vrsqrt.f32 %v2326_v39  ;;  %v598_v55 = vadd.f32 %v597_v58, %v596_v45  ;;  %v698_v46 = vsel %vm2347_vm3, %v2290_v32, %v2344_v63  ;;  %v1321_v33 = vadd.s32 128, %v2369_v16 }
  0x94   : > { %1916 = vrsqrt.f32 %v2341_v54  ;;  %v603_v9 = vadd.f32 %v602_v4, %v521_v62  ;;  %v2373_v19 = vmax.f32 %v591_v6, 1e-12  ;;  %v2397_v37 = vstv %s1825_s29  ;;  %s1503_s29 = sshll.u32 %s1499_s26, 4  ;;  %s1504_s29 = int_to_ptr.hbm [resolvable:$true] %s1503_s29 }
  0x95   : > { %v599_v8 = vrot.slane %v598_v55, 1  ;;  %v506_v57 = vmul.f32 %v442_v23, %v442_v23  ;;  %v522_v47 = vmul.f32 %v458_v24, %v458_v24  ;;  %v610_v48 = vadd.f32 %v490_v30, %v474_v29  ;;  %s1952_s10 = sshra.s32 %s1504_s29, 4  ;;  %s1953_s10 = int_to_ptr.hbm [resolvable:$true] %s1952_s10 }
  0x96   : > { %v604_v21 = vrot.slane %v603_v9, 4  ;;  %1918 = vrsqrt.f32 %v2373_v19  ;;  %v2429_v50 = vadd.s32 %v2397_v37, %v2369_v16  ;;  %v427_v53 = vunpack.c.l.bf16 %v2402_v41  ;;  %s1954_s11 = scalar_lea.hbm %s1953_s10, 128  ;;  %p1959_p3 = scmp.lt.s32.totalorder %s1953_s10, %s3218_s3 }
  0x97   : > { %v2316_v28 = vpop.eup %1910  ;;  %v600_v20 = vadd.f32 %v599_v8, %v598_v55  ;;  %v611_v61 = vadd.f32 %v610_v48, %v506_v57  ;;  %v443_v62 = vunpack.c.l.bf16 %v2410_v43  ;;  %v2453_v1 = vadd.s32 %v2397_v37, %v1321_v33  ;;  %p1955_p0 = scmp.ne.s32.totalorder %s1953_s10, %s1954_s11  ;;  %p1960_p4 = scmp.lt.s32.totalorder %s1958_s14, %s1954_s11 }
  0x98   : > { %v710_v38 = vmul.f32 %v2316_v28, %v2297_v59  ;;  %v2331_v40 = vpop.eup %1912  ;;  %vm716_vm8 = vweird.f32 %v2316_v28  ;;  %v605_v27 = vadd.f32 %v604_v21, %v603_v9  ;;  %v491_v9 = vmul.f32 %v427_v53, %v427_v53 }
  0x99   : > { %v720_v52 = vmul.f32 %v2331_v40, %v2302_v13  ;;  %v2353_v5 = vpop.eup %1914  ;;  %v2386_v26 = vmax.f32 %v600_v20, 1e-12  ;;  %vm726_vm10 = vweird.f32 %v2331_v40  ;;  %vm2416_vm11 = vmor %vm715_vm7, %vm716_vm8  ;;  %v612_v6 = vadd.f32 %v611_v61, %v522_v47  ;;  %p1956_p1 = pnand %p1955_p0, %p2077_p6  ;;  %p1961_p5 = por %p1960_p4, %p1959_p3 }
  0x9a   : > { %v711_v51 = vmul.f32 %v2316_v28, %v710_v38  ;;  %v730_v18 = vmul.f32 %v2353_v5, %v2326_v39  ;;  %v2384_v25 = vpop.eup %1916  ;;  %v606_v45 = vrot.slane %v605_v27, 2  ;;  %vm2443_vm12 = vmor %vm725_vm9, %vm726_vm10  ;;  %v2468_v14 = vadd.s32 %v2397_v37, %v1322_v34 }
  0x9b   : > { %v721_v2 = vmul.f32 %v2331_v40, %v720_v52  ;;  %v740_v42 = vmul.f32 %v2384_v25, %v2341_v54  ;;  %1920 = vrsqrt.f32 %v2386_v26  ;;  %v2436_v52 = vld [vmem:[%s2170_s20 + $0xe8] sm:$0xff]  ;;  %v613_v23 = vrot.slane %v612_v6, 4  ;;  %p1957_p2 = pneg %p1956_p1 }
  0x9c   : > { %v712_v0 = vmul.f32 0.5, %v711_v51  ;;  %v731_v38 = vmul.f32 %v2353_v5, %v730_v18  ;;  %v1323_v51 = vadd.s32 384, %v2369_v16  ;;  %v607_v60 = vadd.f32 %v606_v45, %v605_v27  ;;  %v2456_v55 = vpop.eup %1918 }
  0x9d   : > { %v722_v17 = vmul.f32 0.5, %v721_v2  ;;  %v741_v13 = vmul.f32 %v2384_v25, %v740_v42  ;;  %v475_v2 = vmul.f32 %v411_v49, %v411_v49  ;;  %v459_v8 = vunpack.c.l.bf16 %v2436_v52  ;;  %p1962_p7 = pnand %p1961_p5, %p1957_p2 }
  0x9e   : > { %v713_v15 = vsub.f32 1.5, %v712_v0  ;;  %v732_v58 = vmul.f32 0.5, %v731_v38  ;;  %v608_v4 = vrot.slane %v607_v60, 1  ;;  %v507_v18 = vmul.f32 %v443_v62, %v443_v62 }
  0x9f   : > { %v723_v35 = vsub.f32 1.5, %v722_v17  ;;  %v2475_v17 = vadd.s32 %v2397_v37, %v1323_v51  ;;  %v619_v24 = vadd.f32 %v491_v9, %v475_v2  ;;  %vm736_vm14 = vweird.f32 %v2353_v5 }
  0xa0   : > { %v2389_v31 = vmul.f32 %v2316_v28, %v713_v15  ;;  %v733_v20 = vsub.f32 1.5, %v732_v58  ;;  %v609_v21 = vadd.f32 %v608_v4, %v607_v60  ;;  %v742_v27 = vmul.f32 0.5, %v741_v13  ;;  %vm2549_vm1 = vmor %vm735_vm13, %vm736_vm14 }
  0xa1   : > { %v2432_v59 = vmul.f32 %v2331_v40, %v723_v35  ;;  %v2459_v11 = vpop.eup %1920  ;;  %v750_v29 = vmul.f32 %v2456_v55, %v2373_v19  ;;  %v614_v34 = vadd.f32 %v613_v23, %v612_v6  ;;  %v523_v35 = vmul.f32 %v459_v8, %v459_v8 }
  0xa2   : > { %v718_v0 = vsel %vm2416_vm11, %v2316_v28, %v2389_v31  ;;  %v2483_v33 = vmax.f32 %v609_v21, 1e-12  ;;  %vm745_vm15 = vweird.f32 %v2341_v54  ;;  %v760_v42 = vmul.f32 %v2459_v11, %v2386_v26 }
  0xa3   : > { %v728_v15 = vsel %vm2443_vm12, %v2331_v40, %v2432_v59  ;;  %v1324_v40 = vadd.s32 512, %v2369_v16  ;;  %v620_v45 = vadd.f32 %v619_v24, %v507_v18  ;;  %vm746_vm0 = vweird.f32 %v2384_v25 }
  0xa4   : > { %v1325_v3 = vadd.s32 640, %v2369_v16  ;;  %1922 = vrsqrt.f32 %v2483_v33  ;;  %v743_v63 = vsub.f32 1.5, %v742_v27  ;;  %v615_v48 = vrot.slane %v614_v34, 2  ;;  %vm2562_vm2 = vmor %vm745_vm15, %vm746_vm0 }
  0xa5   : > { %v2513_v7 = vmul.f32 %v2353_v5, %v733_v20  ;;  %v621_v10 = vadd.f32 %v620_v45, %v523_v35  ;;  %v2522_v59 = vadd.s32 %v2397_v37, %v1324_v40  ;;  %v761_v51 = vmul.f32 %v2459_v11, %v760_v42  ;;  %v2579_v42 = vld [vmem:[%s2170_s20 + $0x30] sm:$0xff] }
  0xa6   : > { %v616_v53 = vadd.f32 %v615_v48, %v614_v34  ;;  %v428_v58 = vunpack.c.h.bf16 %v2402_v41  ;;  %v444_v60 = vunpack.c.h.bf16 %v2410_v43  ;;  %v2532_v62 = vmul.f32 %v2384_v25, %v743_v63  ;;  %v2589_v63 = vld [vmem:[%s2170_s20 + $0x70] sm:$0xff] }
  0xa7   : > { %v2535_v13 = vadd.s32 %v2397_v37, %v1325_v3  ;;  %v460_v20 = vunpack.c.h.bf16 %v2436_v52  ;;  %v762_v24 = vmul.f32 0.5, %v761_v51  ;;  %vm755_vm3 = vweird.f32 %v2373_v19 }
  0xa8   : > { %v617_v4 = vrot.slane %v616_v53, 1  ;;  %v508_v27 = vmul.f32 %v444_v60, %v444_v60  ;;  %vm756_vm4 = vweird.f32 %v2456_v55  ;;  %vm765_vm5 = vweird.f32 %v2386_v26 }
  0xa9   : > { %v763_v3 = vsub.f32 1.5, %v762_v24  ;;  %vm766_vm6 = vweird.f32 %v2459_v11  ;;  %vm2619_vm8 = vmor %vm755_vm3, %vm756_vm4  ;;  %vm775_vm10 = vweird.f32 %v2483_v33 }
  0xaa   : > { %v2537_v6 = vpop.eup %1922  ;;  %v618_v31 = vadd.f32 %v617_v4, %v616_v53  ;;  %vm2631_vm9 = vmor %vm765_vm5, %vm766_vm6 }
  0xab   : > { %v770_v28 = vmul.f32 %v2537_v6, %v2483_v33  ;;  %v764_v4 = vmul.f32 %v2459_v11, %v763_v3  ;;  %vm776_vm11 = vweird.f32 %v2537_v6 }
  0xac   : > { %v2573_v34 = vmax.f32 %v618_v31, 1e-12  ;;  %vm2674_vm15 = vmor %vm775_vm10, %vm776_vm11 }
  0xad   : > { %v771_v40 = vmul.f32 %v2537_v6, %v770_v28 }
  0xae   : > { %1924 = vrsqrt.f32 %v2573_v34  ;;  %vm785_vm12 = vweird.f32 %v2573_v34 }
  0xaf   : > { %v772_v48 = vmul.f32 0.5, %v771_v40  ;;  %v768_v40 = vsel %vm2631_vm9, %v2459_v11, %v764_v4 }
  0xb1   : > { %v773_v9 = vsub.f32 1.5, %v772_v48 }
  0xb3   : > { %v774_v11 = vmul.f32 %v2537_v6, %v773_v9 }
  0xb4   : > { %v2636_v28 = vpop.eup %1924 }
  0xb5   : > { %vm786_vm14 = vweird.f32 %v2636_v28 }
  0xc7   : > { %v1023_v30 = vpop.f32.mrf.mxu0 }
  0xc8   : > { %v1222_v38 = vmul.f32 %v1023_v30, %v698_v46  ;;  %v1036_v57 = vpop.f32.mrf.mxu1  ;;  %v751_v46 = vmul.f32 %v2456_v55, %v750_v29  ;;  %v738_v30 = vsel %vm2549_vm1, %v2353_v5, %v2513_v7  ;;  %v748_v5 = vsel %vm2562_vm2, %v2384_v25, %v2532_v62  ;;  %vm2698_vm1 = vmor %vm785_vm12, %vm786_vm14 }
  0xc9   : > { %v1223_v47 = vmul.f32 %v1036_v57, %v708_v22  ;;  %v412_v22 = vunpack.c.h.bf16 %v2394_v36  ;;  %v622_v36 = vrot.slane %v621_v10, 4  ;;  %v413_v25 = vunpack.c.l.bf16 %v2579_v42 }
  0xca   : > { %v2502_v32 = vclamps-f32 %v1222_v38, 0.9999  ;;  %v752_v2 = vmul.f32 0.5, %v751_v46  ;;  %v524_v38 = vmul.f32 %v460_v20, %v460_v20  ;;  %v2591_v46 = vpop.permute.xlu0 %1355 }
  0xcb   : > { %v2510_v12 = vclamps-f32 %v1223_v47, 0.9999  ;;  %v623_v18 = vadd.f32 %v622_v36, %v621_v10  ;;  %v476_v21 = vmul.f32 %v412_v22, %v412_v22  ;;  %v2602_v36 = vld [vmem:[%s2170_s20 + $0xb0] sm:$0xff]  ;;  %vm1357_vm7 = vcmp.eq.s32.totalorder %v2429_v50, %v2591_v46 }
  0xcc   : > { %1270 = vst [vmem:[%s2516_s17] sm:$0xff] %v2502_v32  ;;  %v1286_v49 = vmul.f32 64.0, %v2502_v32  ;;  %v1049_v61 = vpop.f32.mrf.mxu2  ;;  %v753_v47 = vsub.f32 1.5, %v752_v2  ;;  %v2609_v2 = vadd.s32 768, %v2369_v16  ;;  %v445_v19 = vunpack.c.l.bf16 %v2602_v36 }
  0xcd   : > { %1271 = vst [vmem:[%s2516_s17 + $0x8] sm:$0xff] %v2510_v12  ;;  %v1287_v56 = vmul.f32 64.0, %v2510_v12  ;;  %v1224_v41 = vmul.f32 %v1049_v61, %v718_v0  ;;  %v624_v52 = vrot.slane %v623_v18, 2  ;;  %vm1358_vm13 = vcmp.eq.s32.totalorder %v2453_v1, %v2591_v46 }
  0xce   : > { %1302 = vst [vmem:[%s2508_s15] sm:$0xff] %v1286_v49  ;;  %v1062_v43 = vpop.f32.mrf.mxu3  ;;  %v754_v62 = vmul.f32 %v2456_v55, %v753_v47  ;;  %vm1359_vm0 = vcmp.eq.s32.totalorder %v2468_v14, %v2591_v46  ;;  %v446_v4 = vunpack.c.h.bf16 %v2602_v36  ;;  %vm1360_vm5 = vcmp.eq.s32.totalorder %v2475_v17, %v2591_v46 }
  0xcf   : > { %1303 = vst [vmem:[%s2508_s15 + $0x8] sm:$0xff] %v1287_v56  ;;  %v1025_v8 = vpop.f32.mrf.mxu0  ;;  %v1225_v44 = vmul.f32 %v1062_v43, %v728_v15  ;;  %v2556_v0 = vclamps-f32 %v1224_v41, 0.9999  ;;  %v492_v15 = vmul.f32 %v428_v58, %v428_v58  ;;  %v625_v35 = vadd.f32 %v624_v52, %v623_v18  ;;  %v2613_v41 = vld [vmem:[%s2170_s20 + $0xf0] sm:$0xff] }
  0xd0   : > { %v1038_v23 = vpop.f32.mrf.mxu1  ;;  %v429_v58 = vunpack.c.l.bf16 %v2589_v63  ;;  %v461_v52 = vunpack.c.l.bf16 %v2613_v41  ;;  %vm1361_vm9 = vcmp.eq.s32.totalorder %v2522_v59, %v2591_v46  ;;  %vm1362_vm11 = vcmp.eq.s32.totalorder %v2535_v13, %v2591_v46 }
  0xd1   : > { %v2566_v29 = vclamps-f32 %v1225_v44, 0.9999  ;;  %1272 = vst [vmem:[%s2516_s17 + $0x10] sm:$0xff] %v2556_v0  ;;  %v1288_v54 = vmul.f32 64.0, %v2556_v0  ;;  %v628_v57 = vadd.f32 %v492_v15, %v476_v21  ;;  %v626_v7 = vrot.slane %v625_v35, 1 }
  0xd2   : > { %v477_v23 = vmul.f32 %v413_v25, %v413_v25  ;;  %v493_v24 = vmul.f32 %v429_v58, %v429_v58  ;;  %v758_v15 = vsel %vm2619_vm8, %v2456_v55, %v754_v62  ;;  %v525_v48 = vmul.f32 %v461_v52, %v461_v52  ;;  %v2715_v52 = vld [vmem:[%s2170_s20 + $0x38] sm:$0xff] }
  0xd3   : > { %1273 = vst [vmem:[%s2516_s17 + $0x18] sm:$0xff] %v2566_v29  ;;  %v1289_v45 = vmul.f32 64.0, %v2566_v29  ;;  %v629_v10 = vadd.f32 %v628_v57, %v508_v27  ;;  %v627_v53 = vadd.f32 %v626_v7, %v625_v35  ;;  %v780_v27 = vmul.f32 %v2636_v28, %v2573_v34 }
  0xd4   : > { %1304 = vst [vmem:[%s2508_s15 + $0x10] sm:$0xff] %v1288_v54  ;;  %v1051_v22 = vpop.f32.mrf.mxu2  ;;  %v637_v57 = vadd.f32 %v493_v24, %v477_v23  ;;  %v414_v58 = vunpack.c.h.bf16 %v2579_v42 }
  0xd5   : > { %1305 = vst [vmem:[%s2508_s15 + $0x18] sm:$0xff] %v1289_v45  ;;  %v630_v56 = vadd.f32 %v629_v10, %v524_v38  ;;  %v2623_v18 = vmax.f32 %v627_v53, 1e-12  ;;  %v781_v55 = vmul.f32 %v2636_v28, %v780_v27  ;;  %v509_v38 = vmul.f32 %v445_v19, %v445_v19  ;;  %v2723_v27 = vld [vmem:[%s2170_s20 + $0x78] sm:$0xff] }
  0xd6   : > { %v1064_v49 = vpop.f32.mrf.mxu3  ;;  %v462_v19 = vunpack.c.h.bf16 %v2613_v41 }
  0xd7   : > { %v1075_v51 = vpop.f32.mrf.mxu0  ;;  %v631_v20 = vrot.slane %v630_v56, 4  ;;  %1926 = vrsqrt.f32 %v2623_v18  ;;  %v782_v22 = vmul.f32 0.5, %v781_v55  ;;  %v638_v25 = vadd.f32 %v637_v57, %v509_v38  ;;  %v2728_v55 = vld [vmem:[%s2170_s20 + $0xb8] sm:$0xff] }
  0xd8   : > { %v1226_v60 = vmul.f32 %v1075_v51, %v738_v30  ;;  %v1088_v61 = vpop.f32.mrf.mxu1  ;;  %vm795_vm2 = vweird.f32 %v2623_v18 }
  0xd9   : > { %v1227_v43 = vmul.f32 %v1088_v61, %v748_v5  ;;  %v632_v39 = vadd.f32 %v631_v20, %v630_v56  ;;  %v783_v62 = vsub.f32 1.5, %v782_v22  ;;  %v639_v8 = vadd.f32 %v638_v25, %v525_v48 }
  0xda   : > { %v2625_v21 = vclamps-f32 %v1226_v60, 0.9999  ;;  %v430_v60 = vunpack.c.h.bf16 %v2589_v63  ;;  %v778_v20 = vsel %vm2674_vm15, %v2537_v6, %v774_v11 }
  0xdb   : > { %v2638_v31 = vclamps-f32 %v1227_v43, 0.9999  ;;  %v633_v54 = vrot.slane %v632_v39, 2  ;;  %v1389_v43 = vsel %vm1357_vm7, %v2502_v32, 0.0  ;;  %v784_v44 = vmul.f32 %v2636_v28, %v783_v62 }
  0xdc   : > { %1274 = vst [vmem:[%s2516_s17 + $0x20] sm:$0xff] %v2625_v21  ;;  %v1290_v26 = vmul.f32 64.0, %v2625_v21  ;;  %v1101_v35 = vpop.f32.mrf.mxu2  ;;  %v640_v24 = vrot.slane %v639_v8, 4  ;;  %v494_v41 = vmul.f32 %v430_v60, %v430_v60 }
  0xdd   : > { %1275 = vst [vmem:[%s2516_s17 + $0x28] sm:$0xff] %v2638_v31  ;;  %v1291_v30 = vmul.f32 64.0, %v2638_v31  ;;  %v1228_v45 = vmul.f32 %v1101_v35, %v758_v15  ;;  %v634_v3 = vadd.f32 %v633_v54, %v632_v39  ;;  %v2666_v49 = vpop.eup %1926  ;;  %v478_v39 = vmul.f32 %v414_v58, %v414_v58 }
  0xde   : > { %1306 = vst [vmem:[%s2508_s15 + $0x20] sm:$0xff] %v1290_v26  ;;  %v1114_v5 = vpop.f32.mrf.mxu3  ;;  %v790_v33 = vmul.f32 %v2666_v49, %v2623_v18  ;;  %v788_v6 = vsel %vm2698_vm1, %v2636_v28, %v784_v44  ;;  %v510_v15 = vmul.f32 %v446_v4, %v446_v4  ;;  %vm796_vm3 = vweird.f32 %v2666_v49 }
  0xdf   : > { %1307 = vst [vmem:[%s2508_s15 + $0x28] sm:$0xff] %v1291_v30  ;;  %v1077_v47 = vpop.f32.mrf.mxu0  ;;  %v1229_v7 = vmul.f32 %v1114_v5, %v768_v40  ;;  %v2668_v51 = vclamps-f32 %v1228_v45, 0.9999  ;;  %v635_v56 = vrot.slane %v634_v3, 1  ;;  %v641_v35 = vadd.f32 %v640_v24, %v639_v8  ;;  %v2731_v5 = vld [vmem:[%s2170_s20 + $0xf8] sm:$0xff]  ;;  %vm2745_vm4 = vmor %vm795_vm2, %vm796_vm3 }
  0xe0   : > { %v1090_v10 = vpop.f32.mrf.mxu1  ;;  %v791_v34 = vmul.f32 %v2666_v49, %v790_v33  ;;  %v526_v28 = vmul.f32 %v462_v19, %v462_v19  ;;  %v646_v45 = vadd.f32 %v494_v41, %v478_v39  ;;  %v415_v47 = vunpack.c.l.bf16 %v2715_v52 }
  0xe1   : > { %v2682_v61 = vclamps-f32 %v1229_v7, 0.9999  ;;  %1276 = vst [vmem:[%s2516_s17 + $0x30] sm:$0xff] %v2668_v51  ;;  %v1292_v42 = vmul.f32 64.0, %v2668_v51  ;;  %v636_v36 = vadd.f32 %v635_v56, %v634_v3  ;;  %v642_v48 = vrot.slane %v641_v35, 2 }
  0xe2   : > { %v792_v54 = vmul.f32 0.5, %v791_v34  ;;  %v431_v7 = vunpack.c.l.bf16 %v2723_v27  ;;  %v1390_v10 = vsel %vm1358_vm13, %v2510_v12, 0.0  ;;  %v647_v53 = vadd.f32 %v646_v45, %v510_v15 }
  0xe3   : > { %1277 = vst [vmem:[%s2516_s17 + $0x38] sm:$0xff] %v2682_v61  ;;  %v1293_v9 = vmul.f32 64.0, %v2682_v61  ;;  %v2712_v23 = vmax.f32 %v636_v36, 1e-12  ;;  %v447_v56 = vunpack.c.l.bf16 %v2728_v55  ;;  %v643_v62 = vadd.f32 %v642_v48, %v641_v35 }
  0xe4   : > { %1308 = vst [vmem:[%s2508_s15 + $0x30] sm:$0xff] %v1292_v42  ;;  %v1103_v26 = vpop.f32.mrf.mxu2  ;;  %v793_v3 = vsub.f32 1.5, %v792_v54  ;;  %v463_v33 = vunpack.c.l.bf16 %v2731_v5  ;;  %v648_v4 = vadd.f32 %v647_v53, %v526_v28  ;;  %v479_v42 = vmul.f32 %v415_v47, %v415_v47 }
  0xe5   : > { %1309 = vst [vmem:[%s2508_s15 + $0x38] sm:$0xff] %v1293_v9  ;;  %1928 = vrsqrt.f32 %v2712_v23  ;;  %v495_v63 = vmul.f32 %v431_v7, %v431_v7  ;;  %v1391_v8 = vsel %vm1359_vm0, %v2556_v0, 0.0  ;;  %v1405_v9 = vadd.f32 %v1390_v10, %v1389_v43 }
  0xe6   : > { %v1116_v30 = vpop.f32.mrf.mxu3  ;;  %v794_v60 = vmul.f32 %v2666_v49, %v793_v3  ;;  %vm805_vm6 = vweird.f32 %v2712_v23  ;;  %v644_v24 = vrot.slane %v643_v62, 1  ;;  %v649_v39 = vrot.slane %v648_v4, 4 }
  0xe7   : > { %v1127_v40 = vpop.f32.mrf.mxu0  ;;  %v511_v41 = vmul.f32 %v447_v56, %v447_v56  ;;  %v527_v15 = vmul.f32 %v463_v33, %v463_v33  ;;  %v655_v35 = vadd.f32 %v495_v63, %v479_v42  ;;  %v432_v28 = vunpack.c.h.bf16 %v2723_v27 }
  0xe8   : > { %v1230_v38 = vmul.f32 %v1127_v40, %v778_v20  ;;  %v1140_v57 = vpop.f32.mrf.mxu1  ;;  %v798_v44 = vsel %vm2745_vm4, %v2666_v49, %v794_v60  ;;  %v645_v40 = vadd.f32 %v644_v24, %v643_v62  ;;  %v650_v54 = vadd.f32 %v649_v39, %v648_v4 }
  0xe9   : > { %v1231_v11 = vmul.f32 %v1140_v57, %v788_v6  ;;  %v416_v57 = vunpack.c.h.bf16 %v2715_v52  ;;  %v448_v45 = vunpack.c.h.bf16 %v2728_v55  ;;  %v656_v48 = vadd.f32 %v655_v35, %v511_v41 }
  0xea   : > { %v2739_v22 = vclamps-f32 %v1230_v38, 0.9999  ;;  %v651_v3 = vrot.slane %v650_v54, 2  ;;  %v1327_v7 = vadd.s32 896, %v2369_v16  ;;  %v1406_v25 = vadd.f32 %v1405_v9, %v1391_v8 }
  0xeb   : > { %v2750_v58 = vclamps-f32 %v1231_v11, 0.9999  ;;  %v2759_v36 = vpop.eup %1928  ;;  %v2783_v11 = vmax.f32 %v645_v40, 1e-12  ;;  %v480_v52 = vmul.f32 %v416_v57, %v416_v57  ;;  %v464_v27 = vunpack.c.h.bf16 %v2731_v5 }
  0xec   : > { %1278 = vst [vmem:[%s2516_s17 + $0x40] sm:$0xff] %v2739_v22  ;;  %v1294_v18 = vmul.f32 64.0, %v2739_v22  ;;  %v1153_v19 = vpop.f32.mrf.mxu2  ;;  %v800_v34 = vmul.f32 %v2759_v36, %v2712_v23  ;;  %vm806_vm8 = vweird.f32 %v2759_v36  ;;  %v652_v56 = vadd.f32 %v651_v3, %v650_v54 }
  0xed   : > { %1279 = vst [vmem:[%s2516_s17 + $0x48] sm:$0xff] %v2750_v58  ;;  %v1295_v20 = vmul.f32 64.0, %v2750_v58  ;;  %v1232_v26 = vmul.f32 %v1153_v19, %v798_v44  ;;  %1930 = vrsqrt.f32 %v2783_v11  ;;  %vm2798_vm10 = vmor %vm805_vm6, %vm806_vm8  ;;  %v657_v60 = vadd.f32 %v656_v48, %v527_v15 }
  0xee   : > { %1310 = vst [vmem:[%s2508_s15 + $0x40] sm:$0xff] %v1294_v18  ;;  %v1166_v43 = vpop.f32.mrf.mxu3  ;;  %v801_v49 = vmul.f32 %v2759_v36, %v800_v34  ;;  %v496_v62 = vmul.f32 %v432_v28, %v432_v28  ;;  %v512_v33 = vmul.f32 %v448_v45, %v448_v45  ;;  %v2804_v18 = vadd.s32 %v2397_v37, %v2609_v2 }
  0xef   : > { %1311 = vst [vmem:[%s2508_s15 + $0x48] sm:$0xff] %v1295_v20  ;;  %v1129_v6 = vpop.f32.mrf.mxu0  ;;  %v2778_v38 = vclamps-f32 %v1232_v26, 0.9999  ;;  %v1328_v4 = vadd.s32 1024, %v2369_v16  ;;  %v1329_v5 = vadd.s32 1152, %v2369_v16  ;;  %v1392_v23 = vsel %vm1360_vm5, %v2566_v29, 0.0 }
  0xf0   : > { %v1142_v30 = vpop.f32.mrf.mxu1  ;;  %v802_v47 = vmul.f32 0.5, %v801_v49  ;;  %v653_v20 = vrot.slane %v652_v56, 1  ;;  %v658_v44 = vrot.slane %v657_v60, 4  ;;  %v664_v19 = vadd.f32 %v496_v62, %v480_v52 }
  0xf1   : > { %1280 = vst [vmem:[%s2516_s17 + $0x50] sm:$0xff] %v2778_v38  ;;  %v1296_v10 = vmul.f32 64.0, %v2778_v38  ;;  %v1407_v2 = vadd.f32 %v1406_v25, %v1392_v23  ;;  %v1393_v34 = vsel %vm1361_vm9, %v2625_v21, 0.0  ;;  %v528_v26 = vmul.f32 %v464_v27, %v464_v27 }
  0xf2   : > { %v803_v53 = vsub.f32 1.5, %v802_v47  ;;  %v654_v41 = vadd.f32 %v653_v20, %v652_v56  ;;  %v659_v15 = vadd.f32 %v658_v44, %v657_v60  ;;  %v665_v49 = vadd.f32 %v664_v19, %v512_v33 }
  0xf3   : > { %1312 = vst [vmem:[%s2508_s15 + $0x50] sm:$0xff] %v1296_v10  ;;  %v1931_v30 = vpop.eup %1930  ;;  %vm1363_vm12 = vcmp.eq.s32.totalorder %v2804_v18, %v2591_v46  ;;  %v2829_v40 = vadd.s32 %v2397_v37, %v1327_v7  ;;  %v1408_v54 = vadd.f32 %v1407_v2, %v1393_v34  ;;  %v1394_v28 = vsel %vm1362_vm11, %v2638_v31, 0.0 }
  0xf4   : > { %v804_v42 = vmul.f32 %v2759_v36, %v803_v53  ;;  %v1155_v63 = vpop.f32.mrf.mxu2  ;;  %v2835_v57 = vmax.f32 %v654_v41, 1e-12  ;;  %v2842_v45 = vadd.s32 %v2397_v37, %v1328_v4  ;;  %v660_v47 = vrot.slane %v659_v15, 2 }
  0xf5   : > { %v666_v3 = vadd.f32 %v665_v49, %v528_v26  ;;  %v2845_v48 = vadd.s32 %v2397_v37, %v1329_v5  ;;  %v1395_v52 = vsel %vm1363_vm12, %v2668_v51, 0.0  ;;  %vm3222_vm14 = vcmp.eq.s32.totalorder %v2829_v40, %v2591_v46 }
  0xf6   : > { %v1168_v8 = vpop.f32.mrf.mxu3  ;;  %v808_v24 = vsel %vm2798_vm10, %v2759_v36, %v804_v42  ;;  %v1330_v36 = vadd.s32 1280, %v2369_v16  ;;  %1932 = vrsqrt.f32 %v2835_v57  ;;  %v661_v25 = vadd.f32 %v660_v47, %v659_v15 }
  0xf7   : > { %v2813_v9 = vpop.f32.mrf.mxu0  ;;  %v1233_v6 = vmul.f32 %v1166_v43, %v808_v24  ;;  %v810_v43 = vmul.f32 %v1931_v30, %v2783_v11  ;;  %v667_v27 = vrot.slane %v666_v3, 4  ;;  %v1409_v55 = vadd.f32 %v1408_v54, %v1394_v28 }
  0xf8   : > { %v2822_v39 = vpop.f32.mrf.mxu1  ;;  %vm815_vm15 = vweird.f32 %v2783_v11  ;;  %vm816_vm1 = vweird.f32 %v1931_v30  ;;  %vm1365_vm2 = vcmp.eq.s32.totalorder %v2842_v45, %v2591_v46  ;;  %v2866_v33 = vadd.s32 %v2397_v37, %v1330_v36 }
  0xf9   : > { %v2832_v35 = vclamps-f32 %v1233_v6, 0.9999  ;;  %v811_v10 = vmul.f32 %v1931_v30, %v810_v43  ;;  %v662_v4 = vrot.slane %v661_v25, 1  ;;  %v668_v5 = vadd.f32 %v667_v27, %v666_v3  ;;  %vm2871_vm4 = vmor %vm815_vm15, %vm816_vm1 }
  0xfa   : > { %v1410_v63 = vadd.f32 %v1409_v55, %v1395_v52  ;;  %vm1366_vm3 = vcmp.eq.s32.totalorder %v2845_v48, %v2591_v46  ;;  %v1331_v23 = vadd.s32 1408, %v2369_v16  ;;  %v1332_v19 = vadd.s32 1536, %v2369_v16 }
  0xfb   : > { %1281 = vst [vmem:[%s2516_s17 + $0x58] sm:$0xff] %v2832_v35  ;;  %v1297_v7 = vmul.f32 64.0, %v2832_v35  ;;  %v812_v56 = vmul.f32 0.5, %v811_v10  ;;  %v663_v20 = vadd.f32 %v662_v4, %v661_v25  ;;  %v669_v44 = vrot.slane %v668_v5, 2 }
  0xfc   : > { %v2857_v53 = vpop.f32.mrf.mxu2  ;;  %vm1377_vm6 = vcmp.ge.s32.totalorder %v2522_v59, 4000  ;;  %v2877_v2 = vpop.eup %1932  ;;  %v1396_v34 = vsel %vm3222_vm14, %v2682_v61, 0.0  ;;  %v1397_v24 = vsel %vm1365_vm2, %v2739_v22, 0.0  ;;  %vm1378_vm8 = vcmp.ge.s32.totalorder %v2535_v13, 4000 }
  0xfd   : > { %1313 = vst [vmem:[%s2508_s15 + $0x58] sm:$0xff] %v1297_v7  ;;  %v813_v11 = vsub.f32 1.5, %v812_v56  ;;  %v820_v6 = vmul.f32 %v2877_v2, %v2835_v57  ;;  %v2890_v41 = vmax.f32 %v663_v20, 1e-12  ;;  %v670_v15 = vadd.f32 %v669_v44, %v668_v5  ;;  %vm2900_vm1 = vmor %vm1361_vm9, %vm1377_vm6 }
  0xfe   : > { %v2861_v60 = vpop.f32.mrf.mxu3  ;;  %vm1373_vm10 = vcmp.ge.s32.totalorder %v2429_v50, 4000  ;;  %v1411_v49 = vadd.f32 %v1410_v63, %v1396_v34  ;;  %v1333_v54 = vadd.s32 1664, %v2369_v16  ;;  %vm1374_vm15 = vcmp.ge.s32.totalorder %v2453_v1, 4000 }
  0xff   : > { %v1181_v62 = vpop.f32.mrf.mxu0  ;;  %v814_v26 = vmul.f32 %v1931_v30, %v813_v11  ;;  %v821_v47 = vmul.f32 %v2877_v2, %v820_v6  ;;  %1934 = vrsqrt.f32 %v2890_v41  ;;  %vm825_vm9 = vweird.f32 %v2835_v57  ;;  %vm2926_vm14 = vmor %vm1357_vm7, %vm1373_vm10 }
 0x100   : > { %v1194_v42 = vpop.f32.mrf.mxu1  ;;  %v1412_v7 = vadd.f32 %v1411_v49, %v1397_v24  ;;  %vm1381_vm6 = vcmp.ge.s32.totalorder %v2842_v45, 4000  ;;  %v1444_v50 = vsel %vm2900_vm1, -inf, %v2625_v21  ;;  %v2946_v56 = vadd.s32 %v2397_v37, %v1333_v54 }
 0x101   : > { %v818_v36 = vsel %vm2871_vm4, %v1931_v30, %v814_v26  ;;  %v2908_v30 = vadd.s32 %v2397_v37, %v1332_v19  ;;  %vm2915_vm4 = vmor %vm1362_vm11, %vm1378_vm8  ;;  %v822_v25 = vmul.f32 0.5, %v821_v47  ;;  %vm826_vm11 = vweird.f32 %v2877_v2 }
 0x102   : > { %v1234_v28 = vmul.f32 %v2813_v9, %v818_v36  ;;  %v671_v9 = vrot.slane %v670_v15, 1  ;;  %vm2938_vm8 = vmor %vm1358_vm13, %vm1374_vm15  ;;  %vm1382_vm7 = vcmp.ge.s32.totalorder %v2845_v48, 4000  ;;  %v1445_v62 = vsel %vm2915_vm4, -inf, %v2638_v31 }
 0x103   : > { %v823_v4 = vsub.f32 1.5, %v822_v25  ;;  %vm1369_vm13 = vcmp.eq.s32.totalorder %v2908_v30, %v2591_v46  ;;  %vm2962_vm10 = vmor %vm1365_vm2, %vm1381_vm6  ;;  %v1440_v31 = vsel %vm2926_vm14, -inf, %v2502_v32  ;;  %vm1385_vm1 = vcmp.ge.s32.totalorder %v2908_v30, 4000 }
 0x104   : > { %v1207_v3 = vpop.f32.mrf.mxu2  ;;  %v2930_v13 = vclamps-f32 %v1234_v28, 0.9999  ;;  %v672_v55 = vadd.f32 %v671_v9, %v670_v15  ;;  %vm2971_vm15 = vmor %vm825_vm9, %vm826_vm11  ;;  %v1441_v45 = vsel %vm2938_vm8, -inf, %v2510_v12  ;;  %v1456_v63 = vmax.f32 %v1440_v31, %v1444_v50 }
 0x105   : > { %v1935_v11 = vpop.eup %1934  ;;  %vm1367_vm2 = vcmp.eq.s32.totalorder %v2866_v33, %v2591_v46  ;;  %v2984_v32 = vadd.s32 %v2397_v37, %v1331_v23  ;;  %v824_v57 = vmul.f32 %v2877_v2, %v823_v4  ;;  %vm2993_vm14 = vmor %vm1366_vm3, %vm1382_vm7  ;;  %v1457_v12 = vmax.f32 %v1441_v45, %v1445_v62 }
 0x106   : > { %v1220_v10 = vpop.f32.mrf.mxu3  ;;  %1282 = vst [vmem:[%s2516_s17 + $0x60] sm:$0xff] %v2930_v13  ;;  %v1298_v1 = vmul.f32 64.0, %v2930_v13  ;;  %v2975_v42 = vmax.f32 %v672_v55, 1e-12  ;;  %v1398_v20 = vsel %vm1366_vm3, %v2750_v58, 0.0  ;;  %v830_v23 = vmul.f32 %v1935_v11, %v2890_v41  ;;  %vm1436_vm3 = vmor %vm1369_vm13, %vm1385_vm1 }
 0x107   : > { %v1448_v44 = vsel %vm2962_vm10, -inf, %v2739_v22  ;;  %v1413_v19 = vadd.f32 %v1412_v7, %v1398_v20  ;;  %v828_v34 = vsel %vm2971_vm15, %v2877_v2, %v824_v57  ;;  %vm1370_vm4 = vcmp.eq.s32.totalorder %v2946_v56, %v2591_v46 }
 0x108   : > { %1314 = vst [vmem:[%s2508_s15 + $0x60] sm:$0xff] %v1298_v1  ;;  %1936 = vrsqrt.f32 %v2975_v42  ;;  %vm1386_vm9 = vcmp.ge.s32.totalorder %v2946_v56, 4000  ;;  %v1235_v48 = vmul.f32 %v2822_v39, %v828_v34  ;;  %v831_v24 = vmul.f32 %v1935_v11, %v830_v23 }
 0x109   : > { %v1449_v22 = vsel %vm2993_vm14, -inf, %v2750_v58  ;;  %v1452_v2 = vsel %vm1436_vm3, -inf, %v2930_v13  ;;  %v1399_v26 = vsel %vm1367_vm2, %v2778_v38, 0.0  ;;  %v1334_v6 = vadd.s32 1792, %v2369_v16  ;;  %vm1437_vm8 = vmor %vm1370_vm4, %vm1386_vm9 }
 0x10a   : > { %v1335_v15 = vadd.s32 1920, %v2369_v16  ;;  %v1460_v49 = vmax.f32 %v1456_v63, %v1448_v44  ;;  %v1822_v36 = vclamps-f32 %v1235_v48, 0.9999  ;;  %v832_v39 = vmul.f32 0.5, %v831_v24 }
 0x10b   : > { %vm835_vm6 = vweird.f32 %v2890_v41  ;;  %vm836_vm11 = vweird.f32 %v1935_v11  ;;  %v1461_v58 = vmax.f32 %v1457_v12, %v1449_v22  ;;  %v1414_v28 = vadd.f32 %v1413_v19, %v1399_v26 }
 0x10c   : > { %v3032_v54 = vmax.f32 %v1460_v49, %v1452_v2  ;;  %1283 = vst [vmem:[%s2516_s17 + $0x68] sm:$0xff] %v1822_v36  ;;  %v1299_v47 = vmul.f32 64.0, %v1822_v36  ;;  %v833_v3 = vsub.f32 1.5, %v832_v39  ;;  %v1453_v16 = vsel %vm1437_vm8, -inf, %v1822_v36  ;;  %vm3037_vm10 = vmor %vm835_vm6, %vm836_vm11 }
 0x10d   : > { %vm1368_vm7 = vcmp.eq.s32.totalorder %v2984_v32, %v2591_v46  ;;  %vm1375_vm15 = vcmp.ge.s32.totalorder %v2468_v14, 4000  ;;  %v3043_v7 = vmax.f32 %v1461_v58, %v1453_v16  ;;  %v1351_v10 = vadd.s32 %v2397_v37, %v1334_v6 }
 0x10e   : > { %v1937_v43 = vpop.eup %1936  ;;  %1315 = vst [vmem:[%s2508_s15 + $0x68] sm:$0xff] %v1299_v47  ;;  %v834_v9 = vmul.f32 %v1935_v11, %v833_v3  ;;  %v3048_v52 = vadd.s32 %v2397_v37, %v1335_v15  ;;  %vm1379_vm1 = vcmp.ge.s32.totalorder %v2804_v18, 4000  ;;  %v1400_v25 = vsel %vm1368_vm7, %v2832_v35, 0.0  ;;  %vm3070_vm3 = vmor %vm1359_vm0, %vm1375_vm15 }
 0x10f   : > { %v840_v59 = vmul.f32 %v1937_v43, %v2975_v42  ;;  %vm1376_vm14 = vcmp.ge.s32.totalorder %v2475_v17, 4000  ;;  %v1468_v50 = vmax.f32 %v3032_v54, %v3043_v7  ;;  %v1401_v37 = vsel %vm1369_vm13, %v2930_v13, 0.0  ;;  %vm3079_vm13 = vmor %vm1363_vm12, %vm1379_vm1 }
 0x110   : > { %v838_v55 = vsel %vm3037_vm10, %v1935_v11, %v834_v9  ;;  %v1415_v62 = vadd.f32 %v1414_v28, %v1400_v25  ;;  %vm1380_vm9 = vcmp.ge.s32.totalorder %v2829_v40, 4000  ;;  %vm845_vm6 = vweird.f32 %v2975_v42  ;;  %vm3087_vm0 = vmor %vm1360_vm5, %vm1376_vm14 }
 0x111   : > { %v841_v27 = vmul.f32 %v1937_v43, %v840_v59  ;;  %v1236_v4 = vmul.f32 %v2857_v53, %v838_v55  ;;  %vm846_vm11 = vweird.f32 %v1937_v43  ;;  %vm1383_vm8 = vcmp.ge.s32.totalorder %v2866_v33, 4000 }
 0x112   : > { %v1416_v31 = vadd.f32 %v1415_v62, %v1401_v37  ;;  %vm1384_vm10 = vcmp.ge.s32.totalorder %v2984_v32, 4000  ;;  %vm3274_vm12 = vcmp.eq.s32.totalorder %v2829_v40, %v2591_v46  ;;  %vm3099_vm1 = vmor %vm845_vm6, %vm846_vm11  ;;  %vm1371_vm5 = vcmp.eq.s32.totalorder %v1351_v10, %v2591_v46 }
 0x113   : > { %v842_v21 = vmul.f32 0.5, %v841_v27  ;;  %v1823_v53 = vclamps-f32 %v1236_v4, 0.9999  ;;  %vm3095_vm15 = vmor %vm3274_vm12, %vm1380_vm9  ;;  %vm1387_vm14 = vcmp.ge.s32.totalorder %v1351_v10, 4000  ;;  %v1446_v17 = vsel %vm3079_vm13, -inf, %v2668_v51 }
 0x114   : > { %vm1372_vm9 = vcmp.eq.s32.totalorder %v3048_v52, %v2591_v46  ;;  %vm3115_vm6 = vmor %vm1367_vm2, %vm1383_vm8  ;;  %v1442_v51 = vsel %vm3070_vm3, -inf, %v2556_v0  ;;  %v1402_v63 = vsel %vm1370_vm4, %v1822_v36, 0.0  ;;  %v1447_v57 = vsel %vm3095_vm15, -inf, %v2682_v61 }
 0x115   : > { %v843_v13 = vsub.f32 1.5, %v842_v21  ;;  %1284 = vst [vmem:[%s2516_s17 + $0x70] sm:$0xff] %v1823_v53  ;;  %v1300_v42 = vmul.f32 64.0, %v1823_v53  ;;  %v1403_v11 = vsel %vm1371_vm5, %v1823_v53, 0.0  ;;  %vm3130_vm11 = vmor %vm1368_vm7, %vm1384_vm10  ;;  %v1450_v0 = vsel %vm3115_vm6, -inf, %v2778_v38 }
 0x116   : > { %vm1388_vm2 = vcmp.ge.s32.totalorder %v3048_v52, 4000  ;;  %v1417_v32 = vadd.f32 %v1416_v31, %v1402_v63  ;;  %vm3147_vm4 = vmor %vm1371_vm5, %vm1387_vm14  ;;  %v1458_v12 = vmax.f32 %v1442_v51, %v1446_v17  ;;  %v1443_v38 = vsel %vm3087_vm0, -inf, %v2566_v29 }
 0x117   : > { %v844_v40 = vmul.f32 %v1937_v43, %v843_v13  ;;  %1316 = vst [vmem:[%s2508_s15 + $0x70] sm:$0xff] %v1300_v42  ;;  %v1451_v20 = vsel %vm3130_vm11, -inf, %v2832_v35  ;;  %v1454_v23 = vsel %vm3147_vm4, -inf, %v1823_v53  ;;  %vm1439_vm7 = vmor %vm1372_vm9, %vm1388_vm2 }
 0x118   : > { %v1418_v44 = vadd.f32 %v1417_v32, %v1403_v11  ;;  %v1462_v19 = vmax.f32 %v1458_v12, %v1450_v0 }
 0x119   : > { %v848_v56 = vsel %vm3099_vm1, %v1937_v43, %v844_v40 }
 0x11a   : > { %v1237_v61 = vmul.f32 %v2861_v60, %v848_v56  ;;  %v1459_v60 = vmax.f32 %v1443_v38, %v1447_v57  ;;  %v1466_v35 = vmax.f32 %v1462_v19, %v1454_v23 }
 0x11c   : > { %v1824_v34 = vclamps-f32 %v1237_v61, 0.9999  ;;  %v1463_v29 = vmax.f32 %v1459_v60, %v1451_v20 }
 0x11e   : > { %1285 = vst [vmem:[%s2516_s17 + $0x78] sm:$0xff] %v1824_v34  ;;  %v1301_v48 = vmul.f32 64.0, %v1824_v34  ;;  %v1404_v24 = vsel %vm1372_vm9, %v1824_v34, 0.0  ;;  %v1455_v22 = vsel %vm1439_vm7, -inf, %v1824_v34 }
 0x11f   : > { %v1419_v2 = vadd.f32 %v1418_v44, %v1404_v24  ;;  %v1467_v26 = vmax.f32 %v1463_v29, %v1455_v22 }
 0x120   : > { %1965 = shalt.err (!%p1962_p7)
}
 0x121   : > { %1865 = dma.vmem_to_hbm [thread:$0]  (%p2077_p6), %s1502_s28, 2048, %s1504_s29, %s1475_s9   ;;  %1317 = vst [vmem:[%s2508_s15 + $0x78] sm:$0xff] %v1301_v48  ;;  %1420 = vadd.xlane.f32.xlu0 %v1419_v2  ;;  %v1469_v46 = vmax.f32 %v1466_v35, %v1467_v26  ;;  %vm1422_vm3 = vcmask 7168  }
 0x122   : > { %p360_p10 = scmp.lt.s32.totalorder %s2059_s25, 1 }
 0x123   : > { %v1470_v6 = vmax.f32 %v1468_v50, %v1469_v46 }
 0x124   : > { %s3292_s25 = smov (!%p360_p10, %s2059_s25), 1 }
 0x125   : > { %1471 = vmax.xlane.f32.xlu1 %v1470_v6  ;;  %s1663_s16 = sshll.u32 %s3292_s25, 3 }
 0x126   : > { %s363_s26 = scalar_lea.vmem %s3220_s5, %s1663_s16  ;;  %s367_s15 = scalar_lea.vmem %s3221_s6, %s1663_s16 }
 0x194   : > { %v1421_v15 = vpop.xlane.xlu0 %1420 }
 0x195   : > { %1423 = vst.msk [vmem:[%s363_s26] sm:$0xff] %vm1422_vm3, %v1421_v15 }
 0x198   : > { %v1472_v49 = vpop.xlane.xlu1 %1471 }
 0x199   : > { %1473 = vst.msk [vmem:[%s367_s15] sm:$0xff] %vm1422_vm3, %v1472_v49 }
 0x19a PF: > { %s1525_s29 = sand.u32 1, %s1988_s21   ;;  %p1868_p6 = pnand %p1654_p9, %p2081_p8 }
 0x19b   : > { %s1526_s25 = scalar_lea.sflag [#allocation4], %s1525_s29 }
 0x19c   : > { %p1869_p11 = pneg %p1868_p6 }
 0x19e   : > { %1983 = dma.done.wait (%p1869_p11), %s1526_s25, 2048  }
 0x19f   : > { %1985 = vsyncadd (%p1869_p11), %s1526_s25, 4294965248  ;;  %p17_p12 = scmp.ge.s32.totalorder %s2063_s27, 4   ;;  %s3285_s21 = smov %s1992_s22 }
 0x1a0   : > { %s3286_s22 = smov %s1996_s23  ;;  %s3287_s23 = smov %s2075_s30 }
 0x1a1   : > { %s3288_s24 = smov %s2063_s27  ;;  %19 = sbr.rel (!%p17_p12) target bundleno = 3 (0x3), region = 131 }
 0x1a6   :  { %1554 = vsyncpa [#allocation4], 1 }
 0x1a7   :  { %1556 = vsyncpa [#allocation4 + $0x1], 1 }

</bundles_post_ra>
